<compile_context>
chip_gen: v5e
topology: v5e:2x2
jax: 0.10.0
libtpu: 0.0.40
codegen_flags: <defaults>
</compile_context>

<pallas_src>
import functools

import jax
import jax.numpy as jnp
from jax import lax
from jax.experimental import pallas as pl
from jax.experimental.pallas import tpu as pltpu


def _attention_kernel(x_ref, wq_ref, wkvT_ref, wo_ref, bo_ref, o_ref,
                      q_scr, k_scr, v_scr, *, num_heads: int):
    """One (batch element, query tile) grid step.

    x_ref:    (1, N, C)   full sequence of this batch element (K/V source + query slices).
    wq_ref:   (C, C)      Q weight (input-major, softmax scale pre-folded in).
    wkvT_ref: (2C, C)     K|V weight, transposed (output-major) for the transposed proj.
    wo_ref:   (C, C)      proj weight (input-major).
    bo_ref:   (1, C)      proj bias.
    o_ref:    (1, tq, C)  output tile.
    q_scr:    (H, tq, hd) head-major Q for this tile.
    k_scr:    (H, hd, N)  head-major K^T (persists across query tiles of a batch element).
    v_scr:    (H, hd, N)  head-major V^T (persists across query tiles of a batch element).
    """
    H = num_heads
    _, N, C = x_ref.shape
    tq = o_ref.shape[1]
    hd = C // H
    qi = pl.program_id(1)

    # ---- K/V projection: once per batch element (first query tile only). ------------
    # Computed transposed -> (2C, N): the head split is then a sublane-aligned static
    # slice + (nearly) free reshape, and the (H, hd, N) scratch is lane-dense.
    @pl.when(qi == 0)
    def _():
        x_all = x_ref[0]                                                  # (N, C)
        kv_t = lax.dot_general(                                           # (x @ Wkv)^T
            wkvT_ref[...], x_all, (((1,), (1,)), ((), ())),
            preferred_element_type=jnp.float32)                           # (2C, N)
        k_scr[...] = kv_t[:C, :].reshape(H, hd, N).astype(k_scr.dtype)
        v_scr[...] = kv_t[C:, :].reshape(H, hd, N).astype(v_scr.dtype)

    # ---- Q projection for this query tile (scale pre-folded into wq). ---------------
    # The query tile is sliced out of the single x block: no duplicate HBM DMA of x.
    q0 = pl.multiple_of(qi * tq, tq)
    xq = x_ref[0, pl.ds(q0, tq), :]                                       # (tq, C)
    q_lin = jnp.dot(xq, wq_ref[...], preferred_element_type=jnp.float32)  # (tq, C)
    # TODO(synk): these per-head lane slices (tq*C elems per tile, Q only) could also be
    # removed by keeping Q transposed and using a transposed-LHS batched matmul
    # ('hdq,hdk->hqk') once that dot_general form is guaranteed by the Mosaic lowering.
    for h in range(H):
        q_scr[h] = q_lin[:, h * hd:(h + 1) * hd].astype(q_scr.dtype)

    q = q_scr[...]                                                        # (H, tq, hd)
    k_t = k_scr[...]                                                      # (H, hd, N)
    v_t = v_scr[...]                                                      # (H, hd, N)

    # ---- scores: canonical head-batched matmul 'hqd,hdk->hqk'. ----------------------
    s = lax.dot_general(q, k_t, (((2,), (1,)), ((0,), (0,))),
                        preferred_element_type=jnp.float32)               # (H, tq, N)

    # ---- row-wise softmax (exp on EUP; approx reciprocal uses the free EUP slot). ---
    s = s - jnp.max(s, axis=-1, keepdims=True)
    p = jnp.exp(s)
    p = p * pl.reciprocal(jnp.sum(p, axis=-1, keepdims=True), approx=True)

    # ---- context, transposed: 'hdn,hqn->hdq' (V stays in its stationary layout). ----
    ctx_t = lax.dot_general(v_t, p.astype(v_t.dtype),
                            (((2,), (2,)), ((0,), (0,))),
                            preferred_element_type=jnp.float32)           # (H, hd, tq)

    # ---- output projection with the head merge folded in for free: ------------------
    # (H, hd, tq) -> (C, tq) is a tile-row relabel (hd is a multiple of 8), then a single
    # full-C-contraction matmul (tq, C) = ctx^T @ Wproj.  No (H, tq, C) intermediate and
    # no H-way VPU reduction.
    ctx_flat = ctx_t.reshape(C, tq)
    out = lax.dot_general(ctx_flat.astype(wo_ref.dtype), wo_ref[...],
                          (((0,), (0,)), ((), ())),
                          preferred_element_type=jnp.float32)             # (tq, C)
    out = out + bo_ref[...].astype(jnp.float32)

    # attn_drop / proj_drop have p = 0.0 -> identity (eval semantics).
    o_ref[0] = out.astype(o_ref.dtype)                                    # lane-dense store


def _pick_q_tile(n: int) -> int:
    """Largest tile <= 256 dividing N (cap keeps the per-step budget inside v7x's 64 MiB
    VMEM while preserving MXU M-dim fill); fall back to the full (possibly ragged,
    e.g. ViT's N=197) sequence."""
    for cand in (256, 128, 64, 32, 16, 8):
        if n % cand == 0:
            return cand
    return n


def _vmem_limit_bytes(N: int, C: int, H: int, q_tile: int, itemsize: int) -> int:
    """Rough per-step VMEM budget for the compiler's scoped-VMEM limit."""
    hd = C // H
    est = 0
    est += 2 * N * C * itemsize                      # x block (double-buffered)
    est += 2 * q_tile * C * itemsize                 # output block (double-buffered)
    est += 2 * (4 * C * C + 2 * C) * itemsize        # weights + bias (<= 2 buffers each)
    est += (H * q_tile * hd + 2 * H * hd * N) * itemsize   # Q / K / V scratch
    est += 4 * 2 * C * N                             # kv_t f32 temporary
    est += 4 * 3 * H * q_tile * N                    # scores / probs f32 temporaries
    est += 4 * 3 * q_tile * C                        # q_lin / ctx / out f32 temporaries
    est = int(est * 1.5) + (4 << 20)                 # regalloc / spill headroom
    # >= 32 MiB (raises v5e's 16 MiB default), <= 64 MiB (v7x physical VMEM per core).
    return int(max(32 << 20, min(est, 64 << 20)))


# Cache so a JAX version without BlockSpec.pipeline_mode / pl.Buffered only pays the
# failed attempt once.
_WEIGHT_SINGLE_BUFFERING_OK = [True]


def attention_forward(x, w_qkv, w_proj, b_proj, *, num_heads: int,
                      q_tile: int | None = None, compute_dtype=None,
                      single_buffer_weights: bool = True):
    """Fused ViT attention forward.

    x:      (B, N, C)
    w_qkv:  (C, 3C)   pre-transposed (y = x @ W), columns ordered [Q | K | V].
    w_proj: (C, C)    pre-transposed projection weight.
    b_proj: (C,) or (1, C) projection bias.
    compute_dtype: optional dtype (e.g. jnp.bfloat16) to run activations/weights in,
                   with f32 MXU accumulation kept inside the kernel.
    """
    B, N, C = x.shape
    H = num_heads
    assert C % H == 0, "dim must be divisible by num_heads"
    hd = C // H
    scale = hd ** (-0.5)

    if compute_dtype is not None:
        x = x.astype(compute_dtype)
    wdt = x.dtype

    # Weight prep (plain XLA outside the kernel -- free, one-time):
    #  * fold the softmax scale into the Q weight columns,
    #  * split the fused QKV weight; K|V transposed to (2C, C) for the transposed
    #    in-kernel projection (sublane-aligned head split, lane-dense K/V scratch).
    w_q = (w_qkv[:, 0:C] * jnp.asarray(scale, w_qkv.dtype)).astype(wdt)   # (C, C)
    w_kvT = jnp.transpose(w_qkv[:, C:3 * C]).astype(wdt)                  # (2C, C)
    w_o = w_proj.astype(wdt)                                              # (C, C)
    b_o = jnp.reshape(b_proj, (1, C)).astype(wdt)                         # (1, C)

    if q_tile is None:
        q_tile = _pick_q_tile(N)
    assert N % q_tile == 0 and (q_tile % 8 == 0 or q_tile == N)
    n_q_tiles = N // q_tile

    kernel = functools.partial(_attention_kernel, num_heads=H)
    vmem_limit = _vmem_limit_bytes(N, C, H, q_tile, jnp.dtype(wdt).itemsize)

    def build(single_buffered: bool):
        def wspec(shape):
            nd = len(shape)
            imap = lambda b, qi: (0,) * nd  # noqa: E731  (constant block index)
            if single_buffered:
                # Weight block index never changes -> a single buffer suffices.
                return pl.BlockSpec(shape, imap, pipeline_mode=pl.Buffered(1))
            return pl.BlockSpec(shape, imap)

        grid_spec = pltpu.PrefetchScalarGridSpec(
            num_scalar_prefetch=0,
            grid=(B, n_q_tiles),
            in_specs=[
                pl.BlockSpec((1, N, C), lambda b, qi: (b, 0, 0)),  # x (K/V + query source)
                wspec((C, C)),                                      # w_q (pre-scaled)
                wspec((2 * C, C)),                                  # w_kv^T
                wspec((C, C)),                                      # w_proj
                wspec((1, C)),                                      # b_proj
            ],
            out_specs=pl.BlockSpec((1, q_tile, C), lambda b, qi: (b, qi, 0)),
            scratch_shapes=[
                pltpu.VMEM((H, q_tile, hd), wdt),   # head-major Q tile
                pltpu.VMEM((H, hd, N), wdt),        # head-major K^T (whole sequence)
                pltpu.VMEM((H, hd, N), wdt),        # head-major V^T (whole sequence)
            ],
        )
        return pl.pallas_call(
            kernel,
            out_shape=jax.ShapeDtypeStruct((B, N, C), wdt),
            grid_spec=grid_spec,
            compiler_params=pltpu.CompilerParams(
                # batch axis independent across cores; query-tile axis carries the K/V
                # scratch dependency -> "arbitrary".
                dimension_semantics=("parallel", "arbitrary"),
                vmem_limit_bytes=vmem_limit,
            ),
        )

    args = (x, w_q, w_kvT, w_o, b_o)

    use_single = (single_buffer_weights and _WEIGHT_SINGLE_BUFFERING_OK[0]
                  and hasattr(pl, "Buffered"))
    if use_single:
        try:
            return jax.block_until_ready(build(True)(*args))
        except Exception:
            # Older JAX without BlockSpec.pipeline_mode / Buffered(1) support:
            # fall back to default double-buffered weight blocks.
            _WEIGHT_SINGLE_BUFFERING_OK[0] = False
    return build(False)(*args)


def attention_reference(x, w_qkv, w_proj, b_proj, *, num_heads: int):
    """Pure-JAX reference mirroring the PyTorch forward exactly."""
    B, N, C = x.shape
    head_dim = C // num_heads
    scale = head_dim ** (-0.5)
    qkv = x @ w_qkv                                                  # (B, N, 3C)
    qkv = qkv.reshape(B, N, 3, num_heads, head_dim).transpose(2, 0, 3, 1, 4)
    q, k, v = qkv[0], qkv[1], qkv[2]                                 # (B, H, N, hd)
    attn = (q @ jnp.swapaxes(k, -2, -1)) * scale                     # (B, H, N, N)
    attn = jax.nn.softmax(attn, axis=-1)
    out = (attn @ v).transpose(0, 2, 1, 3).reshape(B, N, C)          # (B, N, C)
    return out @ w_proj + jnp.reshape(b_proj, (1, C))


if __name__ == "__main__":
    # Small shapes consistent with the module (dim divisible by num_heads).
    B, N, C = 2, 16, 128
    NUM_HEADS = 8

    key = jax.random.PRNGKey(0)
    kx, kq, kp, kb = jax.random.split(key, 4)

    x = jax.random.normal(kx, (B, N, C), dtype=jnp.float32)
    w_qkv = jax.random.normal(kq, (C, 3 * C), dtype=jnp.float32) * (1.0 / (C ** 0.5))
    w_proj = jax.random.normal(kp, (C, C), dtype=jnp.float32) * (1.0 / (C ** 0.5))
    b_proj = jax.random.normal(kb, (C,), dtype=jnp.float32) * 0.02

    ref = attention_reference(x, w_qkv, w_proj, b_proj, num_heads=NUM_HEADS)

    # Single query tile (tq == N), f32.
    out = attention_forward(x, w_qkv, w_proj, b_proj, num_heads=NUM_HEADS)
    out = jax.block_until_ready(out)
    assert out.shape == (B, N, C)
    assert jnp.allclose(out, ref, rtol=5e-3, atol=5e-3), "Pallas kernel mismatch (full tile)"

    # Multi-tile path: exercises the in-kernel query slicing + K/V scratch reuse.
    out_tiled = attention_forward(x, w_qkv, w_proj, b_proj, num_heads=NUM_HEADS, q_tile=8)
    out_tiled = jax.block_until_ready(out_tiled)
    assert jnp.allclose(out_tiled, ref, rtol=5e-3, atol=5e-3), "Pallas kernel mismatch (tiled)"

    # bf16 compute path (fast MXU mode, f32 accumulation); loose tolerance for bf16 rounding.
    out_bf16 = attention_forward(x, w_qkv, w_proj, b_proj, num_heads=NUM_HEADS,
                                 compute_dtype=jnp.bfloat16)
    out_bf16 = jax.block_until_ready(out_bf16)
    assert out_bf16.dtype == jnp.bfloat16
    assert jnp.allclose(out_bf16.astype(jnp.float32), ref, rtol=1e-1, atol=1e-1), \
        "Pallas kernel mismatch (bf16)"

    print("KERNEL_OK")
</pallas_src>

<mosaic_0001>
module attributes {stable_mosaic.version = 11 : i64} {
  func.func @_attention_kernel(%arg0: i32, %arg1: i32, %arg2: memref<1x16x128xf32, #tpu.memory_space<vmem>>, %arg3: memref<128x128xf32, #tpu.memory_space<vmem>>, %arg4: memref<256x128xf32, #tpu.memory_space<vmem>>, %arg5: memref<128x128xf32, #tpu.memory_space<vmem>>, %arg6: memref<1x128xf32, #tpu.memory_space<vmem>>, %arg7: memref<1x16x128xf32, #tpu.memory_space<vmem>>, %arg8: memref<8x16x16xf32, #tpu.memory_space<vmem>>, %arg9: memref<8x16x16xf32, #tpu.memory_space<vmem>>, %arg10: memref<8x16x16xf32, #tpu.memory_space<vmem>>) attributes {dimension_semantics = [#tpu.dimension_semantics<parallel>, #tpu.dimension_semantics<arbitrary>], iteration_bounds = array<i64: 2, 1>, scalar_prefetch = 0 : i64, scratch_operands = 3 : i64, tpu.core_type = #tpu.core_type<tc>, window_params = [{transform_indices = @transform_0, window_bounds = array<i64: 1, 16, 128>}, {pipeline_mode = #tpu.pipeline_mode<synchronous>, transform_indices = @transform_1, window_bounds = array<i64: 128, 128>}, {pipeline_mode = #tpu.pipeline_mode<synchronous>, transform_indices = @transform_2, window_bounds = array<i64: 256, 128>}, {pipeline_mode = #tpu.pipeline_mode<synchronous>, transform_indices = @transform_3, window_bounds = array<i64: 128, 128>}, {pipeline_mode = #tpu.pipeline_mode<synchronous>, transform_indices = @transform_4, window_bounds = array<i64: 1, 128>}, {transform_indices = @transform_5, window_bounds = array<i64: 1, 16, 128>}]} {
    %c0_i32 = arith.constant 0 : i32
    %0 = arith.cmpi eq, %arg1, %c0_i32 : i32
    %1 = arith.extui %0 : i1 to i32
    %c0_i32_0 = arith.constant 0 : i32
    %2 = arith.cmpi ne, %1, %c0_i32_0 : i32
    scf.if %2 {
      %c0_42 = arith.constant 0 : index
      %c0_43 = arith.constant 0 : index
      %c0_44 = arith.constant 0 : index
      %66 = vector.load %arg2[%c0_42, %c0_43, %c0_44] : memref<1x16x128xf32, #tpu.memory_space<vmem>>, vector<1x16x128xf32>
      %67 = vector.shape_cast %66 : vector<1x16x128xf32> to vector<16x128xf32>
      %c0_45 = arith.constant 0 : index
      %c0_46 = arith.constant 0 : index
      %68 = vector.load %arg4[%c0_45, %c0_46] : memref<256x128xf32, #tpu.memory_space<vmem>>, vector<256x128xf32>
      %cst_47 = arith.constant dense<0.000000e+00> : vector<256x16xf32>
      %69 = tpu.matmul %68, %67, %cst_47 {dimension_numbers = #tpu.dot_dimension_numbers<[1], [1], [0], [0], [0, 0, 1, 0], [], []>} : vector<256x128xf32>, vector<16x128xf32>, vector<256x16xf32> -> vector<256x16xf32>
      %70 = vector.extract_strided_slice %69 {offsets = [0, 0], sizes = [128, 16], strides = [1, 1]} : vector<256x16xf32> to vector<128x16xf32>
      %71 = vector.shape_cast %70 : vector<128x16xf32> to vector<8x16x16xf32>
      %c0_48 = arith.constant 0 : index
      %c0_49 = arith.constant 0 : index
      %c0_50 = arith.constant 0 : index
      %72 = vector.load %arg9[%c0_48, %c0_49, %c0_50] : memref<8x16x16xf32, #tpu.memory_space<vmem>>, vector<8x16x16xf32>
      tpu.vector_store %arg9[%c0_48, %c0_49, %c0_50], %71 {strides = array<i32>} : memref<8x16x16xf32, #tpu.memory_space<vmem>>, vector<8x16x16xf32>,
      %73 = vector.extract_strided_slice %69 {offsets = [128, 0], sizes = [128, 16], strides = [1, 1]} : vector<256x16xf32> to vector<128x16xf32>
      %74 = vector.shape_cast %73 : vector<128x16xf32> to vector<8x16x16xf32>
      %c0_51 = arith.constant 0 : index
      %c0_52 = arith.constant 0 : index
      %c0_53 = arith.constant 0 : index
      %75 = vector.load %arg10[%c0_51, %c0_52, %c0_53] : memref<8x16x16xf32, #tpu.memory_space<vmem>>, vector<8x16x16xf32>
      tpu.vector_store %arg10[%c0_51, %c0_52, %c0_53], %74 {strides = array<i32>} : memref<8x16x16xf32, #tpu.memory_space<vmem>>, vector<8x16x16xf32>,
    } else {
    }
    %c16_i32 = arith.constant 16 : i32
    %3 = arith.muli %arg1, %c16_i32 : i32
    %4 = tpu.assume_multiple %3, 16 : i32
    %c0 = arith.constant 0 : index
    %5 = arith.index_cast %4 : i32 to index
    %c0_1 = arith.constant 0 : index
    %6 = vector.load %arg2[%c0, %5, %c0_1] : memref<1x16x128xf32, #tpu.memory_space<vmem>>, vector<1x16x128xf32>
    %7 = vector.shape_cast %6 : vector<1x16x128xf32> to vector<16x128xf32>
    %c0_2 = arith.constant 0 : index
    %c0_3 = arith.constant 0 : index
    %8 = vector.load %arg3[%c0_2, %c0_3] : memref<128x128xf32, #tpu.memory_space<vmem>>, vector<128x128xf32>
    %cst = arith.constant dense<0.000000e+00> : vector<16x128xf32>
    %9 = tpu.matmul %7, %8, %cst {dimension_numbers = #tpu.dot_dimension_numbers<[1], [0], [0], [1], [0, 0, 1, 1], [], []>} : vector<16x128xf32>, vector<128x128xf32>, vector<16x128xf32> -> vector<16x128xf32>
    %10 = vector.extract_strided_slice %9 {offsets = [0, 0], sizes = [16, 16], strides = [1, 1]} : vector<16x128xf32> to vector<16x16xf32>
    %c0_4 = arith.constant 0 : index
    %c0_5 = arith.constant 0 : index
    %c0_6 = arith.constant 0 : index
    %11 = vector.load %arg8[%c0_4, %c0_5, %c0_6] : memref<8x16x16xf32, #tpu.memory_space<vmem>>, vector<1x16x16xf32>
    %12 = vector.shape_cast %11 : vector<1x16x16xf32> to vector<16x16xf32>
    %13 = vector.shape_cast %10 : vector<16x16xf32> to vector<1x16x16xf32>
    tpu.vector_store %arg8[%c0_4, %c0_5, %c0_6], %13 {strides = array<i32>} : memref<8x16x16xf32, #tpu.memory_space<vmem>>, vector<1x16x16xf32>,
    %14 = vector.extract_strided_slice %9 {offsets = [0, 16], sizes = [16, 16], strides = [1, 1]} : vector<16x128xf32> to vector<16x16xf32>
    %c1 = arith.constant 1 : index
    %c0_7 = arith.constant 0 : index
    %c0_8 = arith.constant 0 : index
    %15 = vector.load %arg8[%c1, %c0_7, %c0_8] : memref<8x16x16xf32, #tpu.memory_space<vmem>>, vector<1x16x16xf32>
    %16 = vector.shape_cast %15 : vector<1x16x16xf32> to vector<16x16xf32>
    %17 = vector.shape_cast %14 : vector<16x16xf32> to vector<1x16x16xf32>
    tpu.vector_store %arg8[%c1, %c0_7, %c0_8], %17 {strides = array<i32>} : memref<8x16x16xf32, #tpu.memory_space<vmem>>, vector<1x16x16xf32>,
    %18 = vector.extract_strided_slice %9 {offsets = [0, 32], sizes = [16, 16], strides = [1, 1]} : vector<16x128xf32> to vector<16x16xf32>
    %c2 = arith.constant 2 : index
    %c0_9 = arith.constant 0 : index
    %c0_10 = arith.constant 0 : index
    %19 = vector.load %arg8[%c2, %c0_9, %c0_10] : memref<8x16x16xf32, #tpu.memory_space<vmem>>, vector<1x16x16xf32>
    %20 = vector.shape_cast %19 : vector<1x16x16xf32> to vector<16x16xf32>
    %21 = vector.shape_cast %18 : vector<16x16xf32> to vector<1x16x16xf32>
    tpu.vector_store %arg8[%c2, %c0_9, %c0_10], %21 {strides = array<i32>} : memref<8x16x16xf32, #tpu.memory_space<vmem>>, vector<1x16x16xf32>,
    %22 = vector.extract_strided_slice %9 {offsets = [0, 48], sizes = [16, 16], strides = [1, 1]} : vector<16x128xf32> to vector<16x16xf32>
    %c3 = arith.constant 3 : index
    %c0_11 = arith.constant 0 : index
    %c0_12 = arith.constant 0 : index
    %23 = vector.load %arg8[%c3, %c0_11, %c0_12] : memref<8x16x16xf32, #tpu.memory_space<vmem>>, vector<1x16x16xf32>
    %24 = vector.shape_cast %23 : vector<1x16x16xf32> to vector<16x16xf32>
    %25 = vector.shape_cast %22 : vector<16x16xf32> to vector<1x16x16xf32>
    tpu.vector_store %arg8[%c3, %c0_11, %c0_12], %25 {strides = array<i32>} : memref<8x16x16xf32, #tpu.memory_space<vmem>>, vector<1x16x16xf32>,
    %26 = vector.extract_strided_slice %9 {offsets = [0, 64], sizes = [16, 16], strides = [1, 1]} : vector<16x128xf32> to vector<16x16xf32>
    %c4 = arith.constant 4 : index
    %c0_13 = arith.constant 0 : index
    %c0_14 = arith.constant 0 : index
    %27 = vector.load %arg8[%c4, %c0_13, %c0_14] : memref<8x16x16xf32, #tpu.memory_space<vmem>>, vector<1x16x16xf32>
    %28 = vector.shape_cast %27 : vector<1x16x16xf32> to vector<16x16xf32>
    %29 = vector.shape_cast %26 : vector<16x16xf32> to vector<1x16x16xf32>
    tpu.vector_store %arg8[%c4, %c0_13, %c0_14], %29 {strides = array<i32>} : memref<8x16x16xf32, #tpu.memory_space<vmem>>, vector<1x16x16xf32>,
    %30 = vector.extract_strided_slice %9 {offsets = [0, 80], sizes = [16, 16], strides = [1, 1]} : vector<16x128xf32> to vector<16x16xf32>
    %c5 = arith.constant 5 : index
    %c0_15 = arith.constant 0 : index
    %c0_16 = arith.constant 0 : index
    %31 = vector.load %arg8[%c5, %c0_15, %c0_16] : memref<8x16x16xf32, #tpu.memory_space<vmem>>, vector<1x16x16xf32>
    %32 = vector.shape_cast %31 : vector<1x16x16xf32> to vector<16x16xf32>
    %33 = vector.shape_cast %30 : vector<16x16xf32> to vector<1x16x16xf32>
    tpu.vector_store %arg8[%c5, %c0_15, %c0_16], %33 {strides = array<i32>} : memref<8x16x16xf32, #tpu.memory_space<vmem>>, vector<1x16x16xf32>,
    %34 = vector.extract_strided_slice %9 {offsets = [0, 96], sizes = [16, 16], strides = [1, 1]} : vector<16x128xf32> to vector<16x16xf32>
    %c6 = arith.constant 6 : index
    %c0_17 = arith.constant 0 : index
    %c0_18 = arith.constant 0 : index
    %35 = vector.load %arg8[%c6, %c0_17, %c0_18] : memref<8x16x16xf32, #tpu.memory_space<vmem>>, vector<1x16x16xf32>
    %36 = vector.shape_cast %35 : vector<1x16x16xf32> to vector<16x16xf32>
    %37 = vector.shape_cast %34 : vector<16x16xf32> to vector<1x16x16xf32>
    tpu.vector_store %arg8[%c6, %c0_17, %c0_18], %37 {strides = array<i32>} : memref<8x16x16xf32, #tpu.memory_space<vmem>>, vector<1x16x16xf32>,
    %38 = vector.extract_strided_slice %9 {offsets = [0, 112], sizes = [16, 16], strides = [1, 1]} : vector<16x128xf32> to vector<16x16xf32>
    %c7 = arith.constant 7 : index
    %c0_19 = arith.constant 0 : index
    %c0_20 = arith.constant 0 : index
    %39 = vector.load %arg8[%c7, %c0_19, %c0_20] : memref<8x16x16xf32, #tpu.memory_space<vmem>>, vector<1x16x16xf32>
    %40 = vector.shape_cast %39 : vector<1x16x16xf32> to vector<16x16xf32>
    %41 = vector.shape_cast %38 : vector<16x16xf32> to vector<1x16x16xf32>
    tpu.vector_store %arg8[%c7, %c0_19, %c0_20], %41 {strides = array<i32>} : memref<8x16x16xf32, #tpu.memory_space<vmem>>, vector<1x16x16xf32>,
    %c0_21 = arith.constant 0 : index
    %c0_22 = arith.constant 0 : index
    %c0_23 = arith.constant 0 : index
    %42 = vector.load %arg8[%c0_21, %c0_22, %c0_23] : memref<8x16x16xf32, #tpu.memory_space<vmem>>, vector<8x16x16xf32>
    %c0_24 = arith.constant 0 : index
    %c0_25 = arith.constant 0 : index
    %c0_26 = arith.constant 0 : index
    %43 = vector.load %arg9[%c0_24, %c0_25, %c0_26] : memref<8x16x16xf32, #tpu.memory_space<vmem>>, vector<8x16x16xf32>
    %c0_27 = arith.constant 0 : index
    %c0_28 = arith.constant 0 : index
    %c0_29 = arith.constant 0 : index
    %44 = vector.load %arg10[%c0_27, %c0_28, %c0_29] : memref<8x16x16xf32, #tpu.memory_space<vmem>>, vector<8x16x16xf32>
    %cst_30 = arith.constant dense<0.000000e+00> : vector<8x16x16xf32>
    %45 = tpu.matmul %42, %43, %cst_30 {dimension_numbers = #tpu.dot_dimension_numbers<[2], [1], [1], [2], [0, 0, 0, 1, 1, 2], [0], [0]>} : vector<8x16x16xf32>, vector<8x16x16xf32>, vector<8x16x16xf32> -> vector<8x16x16xf32>
    %cst_31 = arith.constant dense<0xFF800000> : vector<8x16xf32>
    %46 = vector.multi_reduction <maximumf>, %45, %cst_31 [2] : vector<8x16x16xf32> to vector<8x16xf32>
    %47 = vector.shape_cast %46 : vector<8x16xf32> to vector<8x16x1xf32>
    %48 = vector.broadcast %47 : vector<8x16x1xf32> to vector<8x16x16xf32>
    %49 = arith.subf %45, %48 : vector<8x16x16xf32>
    %50 = math.exp %49 : vector<8x16x16xf32>
    %cst_32 = arith.constant dense<0.000000e+00> : vector<8x16xf32>
    %51 = vector.multi_reduction <add>, %50, %cst_32 [2] : vector<8x16x16xf32> to vector<8x16xf32>
    %52 = vector.shape_cast %51 : vector<8x16xf32> to vector<8x16x1xf32>
    %53 = tpu.reciprocal %52 {approx = true} : vector<8x16x1xf32> -> vector<8x16x1xf32>
    %54 = vector.broadcast %53 : vector<8x16x1xf32> to vector<8x16x16xf32>
    %55 = arith.mulf %50, %54 : vector<8x16x16xf32>
    %cst_33 = arith.constant dense<0.000000e+00> : vector<8x16x16xf32>
    %56 = tpu.matmul %44, %55, %cst_33 {dimension_numbers = #tpu.dot_dimension_numbers<[2], [2], [1], [1], [0, 0, 0, 1, 1, 1], [0], [0]>} : vector<8x16x16xf32>, vector<8x16x16xf32>, vector<8x16x16xf32> -> vector<8x16x16xf32>
    %57 = vector.shape_cast %56 : vector<8x16x16xf32> to vector<128x16xf32>
    %c0_34 = arith.constant 0 : index
    %c0_35 = arith.constant 0 : index
    %58 = vector.load %arg5[%c0_34, %c0_35] : memref<128x128xf32, #tpu.memory_space<vmem>>, vector<128x128xf32>
    %cst_36 = arith.constant dense<0.000000e+00> : vector<16x128xf32>
    %59 = tpu.matmul %57, %58, %cst_36 {dimension_numbers = #tpu.dot_dimension_numbers<[0], [0], [1], [1], [0, 1, 1, 1], [], []>} : vector<128x16xf32>, vector<128x128xf32>, vector<16x128xf32> -> vector<16x128xf32>
    %c0_37 = arith.constant 0 : index
    %c0_38 = arith.constant 0 : index
    %60 = vector.load %arg6[%c0_37, %c0_38] : memref<1x128xf32, #tpu.memory_space<vmem>>, vector<1x128xf32>
    %61 = vector.broadcast %60 : vector<1x128xf32> to vector<16x128xf32>
    %62 = arith.addf %59, %61 : vector<16x128xf32>
    %c0_39 = arith.constant 0 : index
    %c0_40 = arith.constant 0 : index
    %c0_41 = arith.constant 0 : index
    %63 = vector.load %arg7[%c0_39, %c0_40, %c0_41] : memref<1x16x128xf32, #tpu.memory_space<vmem>>, vector<1x16x128xf32>
    %64 = vector.shape_cast %63 : vector<1x16x128xf32> to vector<16x128xf32>
    %65 = vector.shape_cast %62 : vector<16x128xf32> to vector<1x16x128xf32>
    tpu.vector_store %arg7[%c0_39, %c0_40, %c0_41], %65 {strides = array<i32>} : memref<1x16x128xf32, #tpu.memory_space<vmem>>, vector<1x16x128xf32>,
    return
  }
  func.func @transform_0(%arg0: i32, %arg1: i32) -> (i32, i32, i32) {
    %c0_i32 = arith.constant 0 : i32
    %c0_i32_0 = arith.constant 0 : i32
    %c0_i32_1 = arith.constant 0 : i32
    return %arg0, %c0_i32, %c0_i32_0 : i32, i32, i32
  }
  func.func @transform_1(%arg0: i32, %arg1: i32) -> (i32, i32) {
    %c0_i32 = arith.constant 0 : i32
    %c0_i32_0 = arith.constant 0 : i32
    %c0_i32_1 = arith.constant 0 : i32
    return %c0_i32, %c0_i32_0 : i32, i32
  }
  func.func @transform_2(%arg0: i32, %arg1: i32) -> (i32, i32) {
    %c0_i32 = arith.constant 0 : i32
    %c0_i32_0 = arith.constant 0 : i32
    %c0_i32_1 = arith.constant 0 : i32
    return %c0_i32, %c0_i32_0 : i32, i32
  }
  func.func @transform_3(%arg0: i32, %arg1: i32) -> (i32, i32) {
    %c0_i32 = arith.constant 0 : i32
    %c0_i32_0 = arith.constant 0 : i32
    %c0_i32_1 = arith.constant 0 : i32
    return %c0_i32, %c0_i32_0 : i32, i32
  }
  func.func @transform_4(%arg0: i32, %arg1: i32) -> (i32, i32) {
    %c0_i32 = arith.constant 0 : i32
    %c0_i32_0 = arith.constant 0 : i32
    %c0_i32_1 = arith.constant 0 : i32
    return %c0_i32, %c0_i32_0 : i32, i32
  }
  func.func @transform_5(%arg0: i32, %arg1: i32) -> (i32, i32, i32) {
    %c0_i32 = arith.constant 0 : i32
    %c0_i32_0 = arith.constant 0 : i32
    return %arg0, %arg1, %c0_i32 : i32, i32, i32
  }
}

module attributes {stable_mosaic.version = 11 : i64} {
  func.func @_attention_kernel(%arg0: i32, %arg1: i32, %arg2: memref<1x16x128xf32, #tpu.memory_space<vmem>>, %arg3: memref<128x128xf32, #tpu.memory_space<vmem>>, %arg4: memref<256x128xf32, #tpu.memory_space<vmem>>, %arg5: memref<128x128xf32, #tpu.memory_space<vmem>>, %arg6: memref<1x128xf32, #tpu.memory_space<vmem>>, %arg7: memref<1x16x128xf32, #tpu.memory_space<vmem>>, %arg8: memref<8x16x16xf32, #tpu.memory_space<vmem>>, %arg9: memref<8x16x16xf32, #tpu.memory_space<vmem>>, %arg10: memref<8x16x16xf32, #tpu.memory_space<vmem>>) attributes {dimension_semantics = [#tpu.dimension_semantics<parallel>, #tpu.dimension_semantics<arbitrary>], iteration_bounds = array<i64: 2, 1>, scalar_prefetch = 0 : i64, scratch_operands = 3 : i64, tpu.core_type = #tpu.core_type<tc>, window_params = [{transform_indices = @transform_0, window_bounds = array<i64: 1, 16, 128>}, {pipeline_mode = #tpu.pipeline_mode<synchronous>, transform_indices = @transform_1, window_bounds = array<i64: 128, 128>}, {pipeline_mode = #tpu.pipeline_mode<synchronous>, transform_indices = @transform_2, window_bounds = array<i64: 256, 128>}, {pipeline_mode = #tpu.pipeline_mode<synchronous>, transform_indices = @transform_3, window_bounds = array<i64: 128, 128>}, {pipeline_mode = #tpu.pipeline_mode<synchronous>, transform_indices = @transform_4, window_bounds = array<i64: 1, 128>}, {transform_indices = @transform_5, window_bounds = array<i64: 1, 16, 128>}]} {
    %c0_i32 = arith.constant 0 : i32
    %0 = arith.cmpi eq, %arg1, %c0_i32 : i32
    %1 = arith.extui %0 : i1 to i32
    %c0_i32_0 = arith.constant 0 : i32
    %2 = arith.cmpi ne, %1, %c0_i32_0 : i32
    scf.if %2 {
      %c0_42 = arith.constant 0 : index
      %c0_43 = arith.constant 0 : index
      %c0_44 = arith.constant 0 : index
      %66 = vector.load %arg2[%c0_42, %c0_43, %c0_44] : memref<1x16x128xf32, #tpu.memory_space<vmem>>, vector<1x16x128xf32>
      %67 = vector.shape_cast %66 : vector<1x16x128xf32> to vector<16x128xf32>
      %c0_45 = arith.constant 0 : index
      %c0_46 = arith.constant 0 : index
      %68 = vector.load %arg4[%c0_45, %c0_46] : memref<256x128xf32, #tpu.memory_space<vmem>>, vector<256x128xf32>
      %cst_47 = arith.constant dense<0.000000e+00> : vector<256x16xf32>
      %69 = tpu.matmul %68, %67, %cst_47 {dimension_numbers = #tpu.dot_dimension_numbers<[1], [1], [0], [0], [0, 0, 1, 0], [], []>} : vector<256x128xf32>, vector<16x128xf32>, vector<256x16xf32> -> vector<256x16xf32>
      %70 = vector.extract_strided_slice %69 {offsets = [0, 0], sizes = [128, 16], strides = [1, 1]} : vector<256x16xf32> to vector<128x16xf32>
      %71 = vector.shape_cast %70 : vector<128x16xf32> to vector<8x16x16xf32>
      %c0_48 = arith.constant 0 : index
      %c0_49 = arith.constant 0 : index
      %c0_50 = arith.constant 0 : index
      %72 = vector.load %arg9[%c0_48, %c0_49, %c0_50] : memref<8x16x16xf32, #tpu.memory_space<vmem>>, vector<8x16x16xf32>
      tpu.vector_store %arg9[%c0_48, %c0_49, %c0_50], %71 {strides = array<i32>} : memref<8x16x16xf32, #tpu.memory_space<vmem>>, vector<8x16x16xf32>,
      %73 = vector.extract_strided_slice %69 {offsets = [128, 0], sizes = [128, 16], strides = [1, 1]} : vector<256x16xf32> to vector<128x16xf32>
      %74 = vector.shape_cast %73 : vector<128x16xf32> to vector<8x16x16xf32>
      %c0_51 = arith.constant 0 : index
      %c0_52 = arith.constant 0 : index
      %c0_53 = arith.constant 0 : index
      %75 = vector.load %arg10[%c0_51, %c0_52, %c0_53] : memref<8x16x16xf32, #tpu.memory_space<vmem>>, vector<8x16x16xf32>
      tpu.vector_store %arg10[%c0_51, %c0_52, %c0_53], %74 {strides = array<i32>} : memref<8x16x16xf32, #tpu.memory_space<vmem>>, vector<8x16x16xf32>,
    } else {
    }
    %c16_i32 = arith.constant 16 : i32
    %3 = arith.muli %arg1, %c16_i32 : i32
    %4 = tpu.assume_multiple %3, 16 : i32
    %c0 = arith.constant 0 : index
    %5 = arith.index_cast %4 : i32 to index
    %c0_1 = arith.constant 0 : index
    %6 = vector.load %arg2[%c0, %5, %c0_1] : memref<1x16x128xf32, #tpu.memory_space<vmem>>, vector<1x16x128xf32>
    %7 = vector.shape_cast %6 : vector<1x16x128xf32> to vector<16x128xf32>
    %c0_2 = arith.constant 0 : index
    %c0_3 = arith.constant 0 : index
    %8 = vector.load %arg3[%c0_2, %c0_3] : memref<128x128xf32, #tpu.memory_space<vmem>>, vector<128x128xf32>
    %cst = arith.constant dense<0.000000e+00> : vector<16x128xf32>
    %9 = tpu.matmul %7, %8, %cst {dimension_numbers = #tpu.dot_dimension_numbers<[1], [0], [0], [1], [0, 0, 1, 1], [], []>} : vector<16x128xf32>, vector<128x128xf32>, vector<16x128xf32> -> vector<16x128xf32>
    %10 = vector.extract_strided_slice %9 {offsets = [0, 0], sizes = [16, 16], strides = [1, 1]} : vector<16x128xf32> to vector<16x16xf32>
    %c0_4 = arith.constant 0 : index
    %c0_5 = arith.constant 0 : index
    %c0_6 = arith.constant 0 : index
    %11 = vector.load %arg8[%c0_4, %c0_5, %c0_6] : memref<8x16x16xf32, #tpu.memory_space<vmem>>, vector<1x16x16xf32>
    %12 = vector.shape_cast %11 : vector<1x16x16xf32> to vector<16x16xf32>
    %13 = vector.shape_cast %10 : vector<16x16xf32> to vector<1x16x16xf32>
    tpu.vector_store %arg8[%c0_4, %c0_5, %c0_6], %13 {strides = array<i32>} : memref<8x16x16xf32, #tpu.memory_space<vmem>>, vector<1x16x16xf32>,
    %14 = vector.extract_strided_slice %9 {offsets = [0, 16], sizes = [16, 16], strides = [1, 1]} : vector<16x128xf32> to vector<16x16xf32>
    %c1 = arith.constant 1 : index
    %c0_7 = arith.constant 0 : index
    %c0_8 = arith.constant 0 : index
    %15 = vector.load %arg8[%c1, %c0_7, %c0_8] : memref<8x16x16xf32, #tpu.memory_space<vmem>>, vector<1x16x16xf32>
    %16 = vector.shape_cast %15 : vector<1x16x16xf32> to vector<16x16xf32>
    %17 = vector.shape_cast %14 : vector<16x16xf32> to vector<1x16x16xf32>
    tpu.vector_store %arg8[%c1, %c0_7, %c0_8], %17 {strides = array<i32>} : memref<8x16x16xf32, #tpu.memory_space<vmem>>, vector<1x16x16xf32>,
    %18 = vector.extract_strided_slice %9 {offsets = [0, 32], sizes = [16, 16], strides = [1, 1]} : vector<16x128xf32> to vector<16x16xf32>
    %c2 = arith.constant 2 : index
    %c0_9 = arith.constant 0 : index
    %c0_10 = arith.constant 0 : index
    %19 = vector.load %arg8[%c2, %c0_9, %c0_10] : memref<8x16x16xf32, #tpu.memory_space<vmem>>, vector<1x16x16xf32>
    %20 = vector.shape_cast %19 : vector<1x16x16xf32> to vector<16x16xf32>
    %21 = vector.shape_cast %18 : vector<16x16xf32> to vector<1x16x16xf32>
    tpu.vector_store %arg8[%c2, %c0_9, %c0_10], %21 {strides = array<i32>} : memref<8x16x16xf32, #tpu.memory_space<vmem>>, vector<1x16x16xf32>,
    %22 = vector.extract_strided_slice %9 {offsets = [0, 48], sizes = [16, 16], strides = [1, 1]} : vector<16x128xf32> to vector<16x16xf32>
    %c3 = arith.constant 3 : index
    %c0_11 = arith.constant 0 : index
    %c0_12 = arith.constant 0 : index
    %23 = vector.load %arg8[%c3, %c0_11, %c0_12] : memref<8x16x16xf32, #tpu.memory_space<vmem>>, vector<1x16x16xf32>
    %24 = vector.shape_cast %23 : vector<1x16x16xf32> to vector<16x16xf32>
    %25 = vector.shape_cast %22 : vector<16x16xf32> to vector<1x16x16xf32>
    tpu.vector_store %arg8[%c3, %c0_11, %c0_12], %25 {strides = array<i32>} : memref<8x16x16xf32, #tpu.memory_space<vmem>>, vector<1x16x16xf32>,
    %26 = vector.extract_strided_slice %9 {offsets = [0, 64], sizes = [16, 16], strides = [1, 1]} : vector<16x128xf32> to vector<16x16xf32>
    %c4 = arith.constant 4 : index
    %c0_13 = arith.constant 0 : index
    %c0_14 = arith.constant 0 : index
    %27 = vector.load %arg8[%c4, %c0_13, %c0_14] : memref<8x16x16xf32, #tpu.memory_space<vmem>>, vector<1x16x16xf32>
    %28 = vector.shape_cast %27 : vector<1x16x16xf32> to vector<16x16xf32>
    %29 = vector.shape_cast %26 : vector<16x16xf32> to vector<1x16x16xf32>
    tpu.vector_store %arg8[%c4, %c0_13, %c0_14], %29 {strides = array<i32>} : memref<8x16x16xf32, #tpu.memory_space<vmem>>, vector<1x16x16xf32>,
    %30 = vector.extract_strided_slice %9 {offsets = [0, 80], sizes = [16, 16], strides = [1, 1]} : vector<16x128xf32> to vector<16x16xf32>
    %c5 = arith.constant 5 : index
    %c0_15 = arith.constant 0 : index
    %c0_16 = arith.constant 0 : index
    %31 = vector.load %arg8[%c5, %c0_15, %c0_16] : memref<8x16x16xf32, #tpu.memory_space<vmem>>, vector<1x16x16xf32>
    %32 = vector.shape_cast %31 : vector<1x16x16xf32> to vector<16x16xf32>
    %33 = vector.shape_cast %30 : vector<16x16xf32> to vector<1x16x16xf32>
    tpu.vector_store %arg8[%c5, %c0_15, %c0_16], %33 {strides = array<i32>} : memref<8x16x16xf32, #tpu.memory_space<vmem>>, vector<1x16x16xf32>,
    %34 = vector.extract_strided_slice %9 {offsets = [0, 96], sizes = [16, 16], strides = [1, 1]} : vector<16x128xf32> to vector<16x16xf32>
    %c6 = arith.constant 6 : index
    %c0_17 = arith.constant 0 : index
    %c0_18 = arith.constant 0 : index
    %35 = vector.load %arg8[%c6, %c0_17, %c0_18] : memref<8x16x16xf32, #tpu.memory_space<vmem>>, vector<1x16x16xf32>
    %36 = vector.shape_cast %35 : vector<1x16x16xf32> to vector<16x16xf32>
    %37 = vector.shape_cast %34 : vector<16x16xf32> to vector<1x16x16xf32>
    tpu.vector_store %arg8[%c6, %c0_17, %c0_18], %37 {strides = array<i32>} : memref<8x16x16xf32, #tpu.memory_space<vmem>>, vector<1x16x16xf32>,
    %38 = vector.extract_strided_slice %9 {offsets = [0, 112], sizes = [16, 16], strides = [1, 1]} : vector<16x128xf32> to vector<16x16xf32>
    %c7 = arith.constant 7 : index
    %c0_19 = arith.constant 0 : index
    %c0_20 = arith.constant 0 : index
    %39 = vector.load %arg8[%c7, %c0_19, %c0_20] : memref<8x16x16xf32, #tpu.memory_space<vmem>>, vector<1x16x16xf32>
    %40 = vector.shape_cast %39 : vector<1x16x16xf32> to vector<16x16xf32>
    %41 = vector.shape_cast %38 : vector<16x16xf32> to vector<1x16x16xf32>
    tpu.vector_store %arg8[%c7, %c0_19, %c0_20], %41 {strides = array<i32>} : memref<8x16x16xf32, #tpu.memory_space<vmem>>, vector<1x16x16xf32>,
    %c0_21 = arith.constant 0 : index
    %c0_22 = arith.constant 0 : index
    %c0_23 = arith.constant 0 : index
    %42 = vector.load %arg8[%c0_21, %c0_22, %c0_23] : memref<8x16x16xf32, #tpu.memory_space<vmem>>, vector<8x16x16xf32>
    %c0_24 = arith.constant 0 : index
    %c0_25 = arith.constant 0 : index
    %c0_26 = arith.constant 0 : index
    %43 = vector.load %arg9[%c0_24, %c0_25, %c0_26] : memref<8x16x16xf32, #tpu.memory_space<vmem>>, vector<8x16x16xf32>
    %c0_27 = arith.constant 0 : index
    %c0_28 = arith.constant 0 : index
    %c0_29 = arith.constant 0 : index
    %44 = vector.load %arg10[%c0_27, %c0_28, %c0_29] : memref<8x16x16xf32, #tpu.memory_space<vmem>>, vector<8x16x16xf32>
    %cst_30 = arith.constant dense<0.000000e+00> : vector<8x16x16xf32>
    %45 = tpu.matmul %42, %43, %cst_30 {dimension_numbers = #tpu.dot_dimension_numbers<[2], [1], [1], [2], [0, 0, 0, 1, 1, 2], [0], [0]>} : vector<8x16x16xf32>, vector<8x16x16xf32>, vector<8x16x16xf32> -> vector<8x16x16xf32>
    %cst_31 = arith.constant dense<0xFF800000> : vector<8x16xf32>
    %46 = vector.multi_reduction <maximumf>, %45, %cst_31 [2] : vector<8x16x16xf32> to vector<8x16xf32>
    %47 = vector.shape_cast %46 : vector<8x16xf32> to vector<8x16x1xf32>
    %48 = vector.broadcast %47 : vector<8x16x1xf32> to vector<8x16x16xf32>
    %49 = arith.subf %45, %48 : vector<8x16x16xf32>
    %50 = math.exp %49 : vector<8x16x16xf32>
    %cst_32 = arith.constant dense<0.000000e+00> : vector<8x16xf32>
    %51 = vector.multi_reduction <add>, %50, %cst_32 [2] : vector<8x16x16xf32> to vector<8x16xf32>
    %52 = vector.shape_cast %51 : vector<8x16xf32> to vector<8x16x1xf32>
    %53 = tpu.reciprocal %52 {approx = true} : vector<8x16x1xf32> -> vector<8x16x1xf32>
    %54 = vector.broadcast %53 : vector<8x16x1xf32> to vector<8x16x16xf32>
    %55 = arith.mulf %50, %54 : vector<8x16x16xf32>
    %cst_33 = arith.constant dense<0.000000e+00> : vector<8x16x16xf32>
    %56 = tpu.matmul %44, %55, %cst_33 {dimension_numbers = #tpu.dot_dimension_numbers<[2], [2], [1], [1], [0, 0, 0, 1, 1, 1], [0], [0]>} : vector<8x16x16xf32>, vector<8x16x16xf32>, vector<8x16x16xf32> -> vector<8x16x16xf32>
    %57 = vector.shape_cast %56 : vector<8x16x16xf32> to vector<128x16xf32>
    %c0_34 = arith.constant 0 : index
    %c0_35 = arith.constant 0 : index
    %58 = vector.load %arg5[%c0_34, %c0_35] : memref<128x128xf32, #tpu.memory_space<vmem>>, vector<128x128xf32>
    %cst_36 = arith.constant dense<0.000000e+00> : vector<16x128xf32>
    %59 = tpu.matmul %57, %58, %cst_36 {dimension_numbers = #tpu.dot_dimension_numbers<[0], [0], [1], [1], [0, 1, 1, 1], [], []>} : vector<128x16xf32>, vector<128x128xf32>, vector<16x128xf32> -> vector<16x128xf32>
    %c0_37 = arith.constant 0 : index
    %c0_38 = arith.constant 0 : index
    %60 = vector.load %arg6[%c0_37, %c0_38] : memref<1x128xf32, #tpu.memory_space<vmem>>, vector<1x128xf32>
    %61 = vector.broadcast %60 : vector<1x128xf32> to vector<16x128xf32>
    %62 = arith.addf %59, %61 : vector<16x128xf32>
    %c0_39 = arith.constant 0 : index
    %c0_40 = arith.constant 0 : index
    %c0_41 = arith.constant 0 : index
    %63 = vector.load %arg7[%c0_39, %c0_40, %c0_41] : memref<1x16x128xf32, #tpu.memory_space<vmem>>, vector<1x16x128xf32>
    %64 = vector.shape_cast %63 : vector<1x16x128xf32> to vector<16x128xf32>
    %65 = vector.shape_cast %62 : vector<16x128xf32> to vector<1x16x128xf32>
    tpu.vector_store %arg7[%c0_39, %c0_40, %c0_41], %65 {strides = array<i32>} : memref<1x16x128xf32, #tpu.memory_space<vmem>>, vector<1x16x128xf32>,
    return
  }
  func.func @transform_0(%arg0: i32, %arg1: i32) -> (i32, i32, i32) {
    %c0_i32 = arith.constant 0 : i32
    %c0_i32_0 = arith.constant 0 : i32
    %c0_i32_1 = arith.constant 0 : i32
    return %arg0, %c0_i32, %c0_i32_0 : i32, i32, i32
  }
  func.func @transform_1(%arg0: i32, %arg1: i32) -> (i32, i32) {
    %c0_i32 = arith.constant 0 : i32
    %c0_i32_0 = arith.constant 0 : i32
    %c0_i32_1 = arith.constant 0 : i32
    return %c0_i32, %c0_i32_0 : i32, i32
  }
  func.func @transform_2(%arg0: i32, %arg1: i32) -> (i32, i32) {
    %c0_i32 = arith.constant 0 : i32
    %c0_i32_0 = arith.constant 0 : i32
    %c0_i32_1 = arith.constant 0 : i32
    return %c0_i32, %c0_i32_0 : i32, i32
  }
  func.func @transform_3(%arg0: i32, %arg1: i32) -> (i32, i32) {
    %c0_i32 = arith.constant 0 : i32
    %c0_i32_0 = arith.constant 0 : i32
    %c0_i32_1 = arith.constant 0 : i32
    return %c0_i32, %c0_i32_0 : i32, i32
  }
  func.func @transform_4(%arg0: i32, %arg1: i32) -> (i32, i32) {
    %c0_i32 = arith.constant 0 : i32
    %c0_i32_0 = arith.constant 0 : i32
    %c0_i32_1 = arith.constant 0 : i32
    return %c0_i32, %c0_i32_0 : i32, i32
  }
  func.func @transform_5(%arg0: i32, %arg1: i32) -> (i32, i32, i32) {
    %c0_i32 = arith.constant 0 : i32
    %c0_i32_0 = arith.constant 0 : i32
    return %arg0, %arg1, %c0_i32 : i32, i32, i32
  }
}

</mosaic_0001>

<bundles_post_ra>
// kernel: tpu_custom_call.1
= control target key start
LH: loop header
LB: loop body
LE: loop exit
PB: predicated region body
PF: predicated region fallthrough
CT: control target
= control target key end

     0   :  { %s2530_s0 = inlined_call_operand.hbm [shape: f32[2,16,128], index: 0, kind: input, shape index: {}]   ;;  %s2531_s1 = inlined_call_operand.hbm [shape: f32[128,128], index: 1, kind: input, shape index: {}]   ;;  %s2532_s2 = inlined_call_operand.hbm [shape: f32[256,128], index: 2, kind: input, shape index: {}]   ;;  %s2533_s3 = inlined_call_operand.hbm [shape: f32[128,128], index: 3, kind: input, shape index: {}]   ;;  %s2534_s4 = inlined_call_operand.vmem [shape: f32[1,128], index: 4, kind: input, shape index: {}]   ;;  %s2535_s5 = inlined_call_operand.hbm [shape: f32[2,16,128], index: 5, kind: output, shape index: {}]  }
   0x1   :  { %2538 = sst [smem:[#allocation18_spill]] %s2531_s1 }
   0x2   :  { %2539 = sst [smem:[#allocation19_spill]] %s2532_s2 }
   0x3   :  { %2540 = sst [smem:[#allocation20_spill]] %s2533_s3 }
   0x4   :  { %10 = vsyncpa [#allocation6], 0 }
   0x5   :  { %12 = vsyncpa [#allocation6 + $0x1], 0 }
   0x6   :  { %13 = vsyncpa [#allocation9], 0 }
   0x7   :  { %14 = vsyncpa [#allocation12], 0 }
   0x8   :  { %15 = vsyncpa [#allocation7], 0 }
   0x9   :  { %17 = vsyncpa [#allocation7 + $0x1], 0  ;;  %s2076_s18 = smov 0   ;;  %s2078_s19 = smov 0  }
   0xa   :  { %s2080_s20 = smov 0   ;;  %s2082_s21 = smov 0  }
   0xb   :  { %s2084_s22 = smov 0   ;;  %s2086_s23 = smov 0  }
   0xc LB: > { %s1551_s24 = sadd.s32 4294967295, %s2029_s23   ;;  %s1552_s25 = sadd.s32 4294967294, %s2029_s23   ;;  %s2029_s23 = sphi %s2086_s23, %s23_s23   ;;  %s2025_s22 = sphi %s2084_s22, %s2558_s22   ;;  %s2021_s21 = sphi %s2082_s21, %s2557_s21   ;;  %s2017_s20 = sphi %s2080_s20, %s2556_s20   ;;  %s2013_s19 = sphi %s2078_s19, %s2555_s19   ;;  %s2009_s18 = sphi %s2076_s18, %s2554_s18  }
   0xd   : > { %p55_p0 = scmp.ne.s32.totalorder %s2013_s19, %s2009_s18  ;;  %p2110_p1 = scmp.eq.s32.totalorder %s1551_s24, 0 }
   0xe   : > { %p2114_p2 = scmp.eq.s32.totalorder %s1551_s24, 1  ;;  %p171_p3 = scmp.eq.s32.totalorder %s1552_s25, 1 }
   0xf   : > { %p2120_p4 = por %p2110_p1, %p55_p0  ;;  %p1553_p5 = scmp.ge.s32.totalorder %s2029_s23, 1 }
  0x10   : > { %p2125_p6 = por %p171_p3, %p55_p0  ;;  %p178_p7 = scmp.lt.s32.totalorder %s2029_s23, 3 }
  0x11   : > { %s2545_s1 = sld [smem:[#allocation18_spill]]  ;;  %s2031_s9 = smov [#allocation8]  }
  0x12   : > { %p2133_p8 = pnand %p1553_p5, %p178_p7  ;;  %s191_s10 = sshll.u32 %s2031_s9, 4  ;;  %s192_s10 = int_to_ptr.vmem [resolvable:$true] %s191_s10 }
  0x13   : > { %p1557_p11 = scmp.ge.s32.totalorder %s2029_s23, 2  ;;  %s2548_s2 = sld [smem:[#allocation19_spill]] }
  0x14   : > { %p1666_p9 = pneg %p2133_p8  ;;  %s2536_s15 = smov 128  }
  0x15   : > { %s2537_s16 = smov 8   ;;  %s2034_s17 = smov [#allocation10]  }
  0x16   : > { %p2141_p10 = pnand %p1666_p9, %p2110_p1  ;;  %s205_s24 = sshll.u32 %s2034_s17, 4  ;;  %s206_s24 = int_to_ptr.vmem [resolvable:$true] %s205_s24 }
  0x17   : > { %s189_s7 = sshll.u32 %s2545_s1, 4  ;;  %s2549_s3 = sld [smem:[#allocation20_spill]]  ;;  %s190_s7 = int_to_ptr.hbm [resolvable:$true] %s189_s7 }
  0x18   : > { %1669 = dma.hbm_to_vmem [thread:$0]  (!%p2141_p10), %s190_s7, 2048, %s192_s10, [#allocation9], %s2536_s15, %s2536_s15, %s2537_s16  }
  0x19   : > { %s203_s14 = sshll.u32 %s2548_s2, 4  ;;  %s2035_s9 = smov [#allocation11]   ;;  %s204_s14 = int_to_ptr.hbm [resolvable:$true] %s203_s14 }
  0x1a   : > { %1672 = dma.hbm_to_vmem [thread:$0]  (!%p2141_p10), %s204_s14, 4096, %s206_s24, [#allocation9], %s2536_s15, %s2536_s15, %s2537_s16  }
  0x1b   : > { %s219_s12 = sshll.u32 %s2035_s9, 4  ;;  %s35_s7 = sadd.s32 1, %s2025_s22  ;;  %s220_s12 = int_to_ptr.vmem [resolvable:$true] %s219_s12 }
  0x1c   : > { %p37_p12 = scmp.ge.s32.totalorder %s35_s7, 2  ;;  %s42_s10 = sadd.s32 1, %s2017_s20 }
  0x1d   : > { %s217_s6 = sshll.u32 %s2549_s3, 4  ;;  %p49_p13 = scmp.ne.s32.totalorder %s2017_s20, %s2013_s19  ;;  %s218_s6 = int_to_ptr.hbm [resolvable:$true] %s217_s6 }
  0x1e   : > { %1675 = dma.hbm_to_vmem [thread:$0]  (!%p2141_p10), %s218_s6, 2048, %s220_s12, [#allocation12], %s2536_s15, %s2536_s15, %s2537_s16  }
  0x1f   : > { %p50_p0 = scmp.eq.s32.totalorder %s2029_s23, 0  ;;  %s2560_s7 = smov (%p37_p12, %s35_s7), 0 }
  0x20   : > { %p2180_p5 = por %p2114_p2, %p49_p13  ;;  %s39_s14 = ssub.s32 %s2025_s22, %s2560_s7 }
  0x21   : > { %p2174_p3 = por %p50_p0, %p49_p13  ;;  %p1687_p7 = scmp.lt.s32.totalorder %s2029_s23, 2 }
  0x22   : > { %p40_p9 = scmp.eq.s32.totalorder %s39_s14, 0  ;;  %s236_s17 = sand.u32 1, %s2017_s20  }
  0x23   : > { %s1558_s24 = sshll.u32 %s236_s17, 4  ;;  %s1620_s30 = sshll.u32 %s2025_s22, 4 }
  0x24   : > { %s2189_s25 = scalar_select %p40_p9, %s2017_s20, %s42_s10  }
  0x25   : > { %s245_s12 = scalar_lea.hbm %s2530_s0, %s1620_s30  ;;  %s240_s15 = scalar_lea.vmem [#allocation5], %s1558_s24 }
  0x26   : > { %s248_s16 = sshll.u32 %s240_s15, 4  ;;  %s246_s27 = sshll.u32 %s245_s12, 4  ;;  %s249_s16 = int_to_ptr.vmem [resolvable:$true] %s248_s16  ;;  %s247_s27 = int_to_ptr.hbm [resolvable:$true] %s246_s27 }
  0x27   : > { %p1677_p2 = pnand %p1687_p7, %p2174_p3  ;;  %s237_s1 = scalar_lea.sflag [#allocation6], %s236_s17 }
  0x28   : > { %s2552_s2 = smov 8   ;;  %s2553_s3 = smov 128  }
  0x29   : > { %1679 = dma.hbm_to_vmem [thread:$0]  (!%p1677_p2), %s247_s27, 256, %s249_s16, %s237_s1, %s2553_s3, %s2553_s3, %s2552_s2  }
  0x2a   : > { %260 = sbr.rel (%p2133_p8) target bundleno = 1188 (0x4a4), region = 40  ;;  %s2203_s10 = sand.u32 (!%p2133_p8), 1, %s2013_s19  }
  0x2b   : > { %s1562_s15 = sshll.u32 (!%p2133_p8), %s2203_s10, 4  ;;  %s263_s14 = scalar_lea.sflag (!%p2133_p8), [#allocation6], %s2203_s10 }
  0x2c   : > { %s266_s13 = scalar_lea.vmem (!%p2133_p8), [#allocation5], %s1562_s15 }
  0x2f   : > { %1992 = dma.done.wait (%p2120_p4), %s263_s14, 256  }
  0x30   : > { %1994 = vsyncadd (%p2120_p4), %s263_s14, 4294967040 }
  0x31   : > { %1996 = dma.done.wait (%p2110_p1), [#allocation9], 6144  }
  0x32   : > { %1998 = vsyncadd (%p2110_p1), [#allocation9], 4294961152 }
  0x33   : > { %2000 = dma.done.wait (%p2110_p1), [#allocation12], 2048  }
  0x34   : > { %2002 = vsyncadd (%p2110_p1), [#allocation12], 4294965248  ;;  %v2221_v0 = vld [vmem:[%s266_s13 + $0x8] sm:$0xff]  ;;  %v2225_v1 = vld [vmem:[%s266_s13] sm:$0xff]  ;;  %vm461_vm0 = vcmask 130048   ;;  %s2036_s1 = smov 80  }
  0x35   : > { %1622 = vmatpush.xpose.msra.mxu1 %v2221_v0  ;;  %362 = vmatpush.xpose.msra.mxu0 %v2221_v0  ;;  %v513_v2 = vld [vmem:[#allocation8 + $0x78] sm:$0xff]  ;;  %v334_v3 = vld [vmem:[#allocation10 + $0x90] sm:$0xff]  ;;  %v511_v5 = vld [vmem:[#allocation8 + $0x68] sm:$0xff]  ;;  %s2037_s2 = smov 112   ;;  %s2038_s3 = smov 64  }
  0x36   : > { %1623 = vmatpush.xpose.msra.mxu2 %v2221_v0  ;;  %1624 = vmatpush.xpose.msra.mxu3 %v2221_v0  ;;  %v512_v4 = vld [vmem:[#allocation8 + $0x70] sm:$0xff]  ;;  %v510_v6 = vld [vmem:[#allocation8 + $0x60] sm:$0xff]  ;;  %v509_v7 = vld [vmem:[#allocation8 + $0x58] sm:$0xff]  ;;  %s2039_s26 = smov 96   ;;  %s2040_s28 = smov 16  }
  0x37   : > { %v335_v8 = vld [vmem:[#allocation10 + $0x98] sm:$0xff]  ;;  %v508_v9 = vld [vmem:[#allocation8 + $0x50] sm:$0xff]  ;;  %v507_v10 = vld [vmem:[#allocation8 + $0x48] sm:$0xff]  ;;  %s2041_s8 = smov 48   ;;  %s2042_s16 = smov 32  }
  0x38   : > { %v316_v11 = vld [vmem:[#allocation10] sm:$0xff]  ;;  %v505_v13 = vld [vmem:[#allocation8 + $0x38] sm:$0xff]  ;;  %v504_v15 = vld [vmem:[#allocation8 + $0x30] sm:$0xff]  ;;  %s1621_s30 = sshll.u32 %s2021_s21, 4  ;;  %s308_s27 = scalar_lea.vmem [#allocation13], %s1562_s15 }
  0x39   : > { %1625 = vmatpush.xpose.msra.mxu1 %v2225_v1  ;;  %363 = vmatpush.xpose.msra.mxu0 %v2225_v1  ;;  %v506_v12 = vld [vmem:[#allocation8 + $0x40] sm:$0xff]  ;;  %v503_v16 = vld [vmem:[#allocation8 + $0x28] sm:$0xff]  ;;  %v501_v19 = vld [vmem:[#allocation8 + $0x18] sm:$0xff]  ;;  %s1432_s12 = scalar_lea.hbm %s2535_s5, %s1621_s30  ;;  %s1433_s14 = sshll.u32 %s308_s27, 4  ;;  %s1434_s14 = int_to_ptr.vmem [resolvable:$true] %s1433_s14 }
  0x3a   : > { %1626 = vmatpush.xpose.msra.mxu2 %v2225_v1  ;;  %1627 = vmatpush.xpose.msra.mxu3 %v2225_v1  ;;  %v336_v14 = vld [vmem:[#allocation10 + $0xa0] sm:$0xff]  ;;  %v317_v17 = vld [vmem:[#allocation10 + $0x8] sm:$0xff]  ;;  %v500_v21 = vld [vmem:[#allocation8 + $0x10] sm:$0xff]  ;;  %s1435_s13 = sshll.u32 %s1432_s12, 4  ;;  %s1959_s15 = scalar_lea.hbm %s2535_s5, 32  ;;  %s1436_s13 = int_to_ptr.hbm [resolvable:$true] %s1435_s13 }
  0x3b   : > { %v502_v18 = vld [vmem:[#allocation8 + $0x20] sm:$0xff]  ;;  %v337_v20 = vld [vmem:[#allocation10 + $0xa8] sm:$0xff]  ;;  %v338_v24 = vld [vmem:[#allocation10 + $0xb0] sm:$0xff] }
  0x3c   : > { %418 = vmatmul.f32.vlgmr.msra.gmra.mxu1 %v334_v3  ;;  %364 = vmatmul.f32.vlgmr.msra.gmra.mxu0 %v316_v11  ;;  %v499_v22 = vld [vmem:[#allocation8 + $0x8] sm:$0xff]  ;;  %v498_v23 = vld [vmem:[#allocation8] sm:$0xff]  ;;  %v318_v25 = vld [vmem:[#allocation10 + $0x10] sm:$0xff] }
  0x3d   : > { %514 = vmatpush.msrb.mxu1 %v513_v2  ;;  %v339_v26 = vld [vmem:[#allocation10 + $0xb8] sm:$0xff]  ;;  %v340_v28 = vld [vmem:[#allocation10 + $0xc0] sm:$0xff]  ;;  %v321_v30 = vld [vmem:[#allocation10 + $0x28] sm:$0xff] }
  0x3e   : > { %v319_v27 = vld [vmem:[#allocation10 + $0x18] sm:$0xff]  ;;  %v320_v29 = vld [vmem:[#allocation10 + $0x20] sm:$0xff]  ;;  %v322_v31 = vld [vmem:[#allocation10 + $0x30] sm:$0xff] }
  0x3f   : > { %515 = vmatpush.msrb.mxu1 %v512_v4  ;;  %v323_v32 = vld [vmem:[#allocation10 + $0x38] sm:$0xff]  ;;  %v324_v33 = vld [vmem:[#allocation10 + $0x40] sm:$0xff]  ;;  %v325_v34 = vld [vmem:[#allocation10 + $0x48] sm:$0xff] }
  0x40   : > { %v326_v35 = vld [vmem:[#allocation10 + $0x50] sm:$0xff]  ;;  %v327_v37 = vld [vmem:[#allocation10 + $0x58] sm:$0xff]  ;;  %v328_v39 = vld [vmem:[#allocation10 + $0x60] sm:$0xff] }
  0x41   : > { %516 = vmatpush.msrb.mxu1 %v511_v5  ;;  %v329_v42 = vld [vmem:[#allocation10 + $0x68] sm:$0xff]  ;;  %v330_v46 = vld [vmem:[#allocation10 + $0x70] sm:$0xff]  ;;  %v331_v50 = vld [vmem:[#allocation10 + $0x78] sm:$0xff] }
  0x42   : > { %v341_v45 = vld [vmem:[#allocation10 + $0xc8] sm:$0xff]  ;;  %v342_v61 = vld [vmem:[#allocation10 + $0xd0] sm:$0xff] }
  0x43   : > { %517 = vmatpush.msrb.mxu1 %v510_v6  ;;  %439 = vmatmul.f32.vlgmr.msra.gmra.mxu2 %v341_v45  ;;  %v345_v11 = vld [vmem:[#allocation10 + $0xe8] sm:$0xff] }
  0x44   : > { %421 = vmatmul.f32.gmra.mxu1 %v335_v8  ;;  %367 = vmatmul.f32.gmra.mxu0 %v317_v17 }
  0x45   : > { %518 = vmatpush.msrb.mxu1 %v509_v7  ;;  %442 = vmatmul.f32.vlgmr.msra.gmra.mxu3 %v342_v61 }
  0x47   : > { %519 = vmatpush.msrb.mxu1 %v508_v9  ;;  %v344_v9 = vld [vmem:[#allocation10 + $0xe0] sm:$0xff] }
  0x49   : > { %520 = vmatpush.msrb.mxu1 %v507_v10 }
  0x4b   : > { %521 = vmatpush.msrb.mxu1 %v506_v12 }
  0x4c   : > { %424 = vmatmul.f32.gmra.mxu1 %v336_v14  ;;  %370 = vmatmul.f32.gmra.mxu0 %v318_v25 }
  0x4d   : > { %522 = vmatpush.msrb.mxu1 %v505_v13  ;;  %v346_v13 = vld [vmem:[#allocation10 + $0xf0] sm:$0xff] }
  0x4f   : > { %523 = vmatpush.msrb.mxu1 %v504_v15  ;;  %v347_v15 = vld [vmem:[#allocation10 + $0xf8] sm:$0xff] }
  0x51   : > { %524 = vmatpush.msrb.mxu1 %v503_v16 }
  0x53   : > { %525 = vmatpush.msrb.mxu1 %v502_v18 }
  0x54   : > { %427 = vmatmul.f32.gmra.mxu1 %v337_v20  ;;  %373 = vmatmul.f32.gmra.mxu0 %v319_v27 }
  0x55   : > { %526 = vmatpush.msrb.mxu1 %v501_v19 }
  0x57   : > { %527 = vmatpush.msrb.mxu1 %v500_v21 }
  0x59   : > { %528 = vmatpush.msrb.mxu1 %v499_v22 }
  0x5b   : > { %529 = vmatpush.msrb.mxu1 %v498_v23 }
  0x5c   : > { %430 = vmatmul.f32.gmra.mxu1 %v338_v24  ;;  %376 = vmatmul.f32.gmra.mxu0 %v320_v29 }
  0x64   : > { %433 = vmatmul.f32.gmra.mxu1 %v339_v26  ;;  %379 = vmatmul.f32.gmra.mxu0 %v321_v30 }
  0x6c   : > { %436 = vmatmul.f32.gmra.mxu1 %v340_v28  ;;  %382 = vmatmul.f32.gmra.mxu0 %v322_v31 }
  0x74   : > { %530 = vmatmul.f32.vlgmr.msrb.gmra.mxu1 %v2225_v1  ;;  %385 = vmatmul.f32.gmra.mxu0 %v323_v32 }
  0x7c   : > { %533 = vmatmul.f32.gmra.mxu1 %v2221_v0  ;;  %388 = vmatmul.f32.gmra.mxu0 %v324_v33  ;;  %v343_v0 = vld [vmem:[#allocation10 + $0xd8] sm:$0xff] }
  0x7d   : > { %445 = vmatmul.f32.gmra.mxu3 %v343_v0 }
  0x84   : > { %391 = vmatmul.f32.gmra.mxu0 %v325_v34 }
  0x85   : > { %448 = vmatmul.f32.gmra.mxu3 %v344_v9 }
  0x8c   : > { %394 = vmatmul.f32.gmra.mxu0 %v326_v35 }
  0x8d   : > { %451 = vmatmul.f32.gmra.mxu3 %v345_v11 }
  0x94   : > { %397 = vmatmul.f32.gmra.mxu0 %v327_v37 }
  0x95   : > { %454 = vmatmul.f32.gmra.mxu3 %v346_v13 }
  0x9c   : > { %400 = vmatmul.f32.gmra.mxu0 %v328_v39 }
  0x9d   : > { %457 = vmatmul.f32.gmra.mxu3 %v347_v15 }
  0xa4   : > { %403 = vmatmul.f32.gmra.mxu0 %v329_v42 }
  0xac   : > { %406 = vmatmul.f32.gmra.mxu0 %v330_v46 }
  0xb4   : > { %409 = vmatmul.f32.gmra.mxu0 %v331_v50 }
  0xb9   : > { %v419_v36 = vpop.f32.mrf.mxu1  ;;  %v365_v40 = vpop.f32.mrf.mxu0 }
  0xba   : > { %480 = vst.msk [vmem:[#allocation4 + $0x10] sm:$0xff] %vm461_vm0, %v419_v36 }
  0xbb   : > { %462 = vst.msk [vmem:[#allocation3] sm:$0xff] %vm461_vm0, %v365_v40 }
  0xc1   : > { %v422_v38 = vpop.f32.mrf.mxu1  ;;  %v368_v43 = vpop.f32.mrf.mxu0 }
  0xc2   : > { %481 = vst.msk [vmem:[#allocation4 + $0x18] sm:$0xff] %vm461_vm0, %v422_v38  ;;  %v621_v48 = vld [vmem:[#allocation3] sm:$0xff] }
  0xc3   : > { %463 = vst.msk [vmem:[#allocation3 + $0x8] sm:$0xff] %vm461_vm0, %v368_v43 }
  0xc6   : > { %v440_v22 = vpop.f32.mrf.mxu2 }
  0xc7   : > { %487 = vst.msk [vmem:[#allocation4 + $0x48] sm:$0xff] %vm461_vm0, %v440_v22 }
  0xc9   : > { %v425_v41 = vpop.f32.mrf.mxu1  ;;  %v371_v53 = vpop.f32.mrf.mxu0 }
  0xca   : > { %482 = vst.msk [vmem:[#allocation4 + $0x20] sm:$0xff] %vm461_vm0, %v425_v41  ;;  %v622_v47 = vld [vmem:[#allocation3 + $0x8] sm:$0xff] }
  0xcb   : > { %673 = vmatpush.msra.mxu2 %v622_v47  ;;  %464 = vst.msk [vmem:[#allocation3 + $0x10] sm:$0xff] %vm461_vm0, %v371_v53 }
  0xcd   : > { %674 = vmatpush.msra.mxu2 %v621_v48 }
  0xd1   : > { %v428_v44 = vpop.f32.mrf.mxu1  ;;  %v374_v55 = vpop.f32.mrf.mxu0 }
  0xd2   : > { %483 = vst.msk [vmem:[#allocation4 + $0x28] sm:$0xff] %vm461_vm0, %v428_v44  ;;  %v623_v60 = vld [vmem:[#allocation3 + $0x10] sm:$0xff]  ;;  %v443_v44 = vpop.f32.mrf.mxu3 }
  0xd3   : > { %465 = vst.msk [vmem:[#allocation3 + $0x18] sm:$0xff] %vm461_vm0, %v374_v55 }
  0xd4   : > { %488 = vst.msk [vmem:[#allocation4 + $0x50] sm:$0xff] %vm461_vm0, %v443_v44 }
  0xd9   : > { %v431_v49 = vpop.f32.mrf.mxu1  ;;  %v377_v58 = vpop.f32.mrf.mxu0 }
  0xda   : > { %484 = vst.msk [vmem:[#allocation4 + $0x30] sm:$0xff] %vm461_vm0, %v431_v49  ;;  %v624_v59 = vld [vmem:[#allocation3 + $0x18] sm:$0xff] }
  0xdb   : > { %466 = vst.msk [vmem:[#allocation3 + $0x20] sm:$0xff] %vm461_vm0, %v377_v58  ;;  %702 = vmatpush.msrb.mxu3 %v624_v59 }
  0xdd   : > { %703 = vmatpush.msrb.mxu3 %v623_v60 }
  0xe1   : > { %v434_v51 = vpop.f32.mrf.mxu1  ;;  %v380_v63 = vpop.f32.mrf.mxu0 }
  0xe2   : > { %485 = vst.msk [vmem:[#allocation4 + $0x38] sm:$0xff] %vm461_vm0, %v434_v51  ;;  %v625_v3 = vld [vmem:[#allocation3 + $0x20] sm:$0xff] }
  0xe3   : > { %467 = vst.msk [vmem:[#allocation3 + $0x28] sm:$0xff] %vm461_vm0, %v380_v63 }
  0xe9   : > { %v437_v52 = vpop.f32.mrf.mxu1  ;;  %v383_v1 = vpop.f32.mrf.mxu0 }
  0xea   : > { %486 = vst.msk [vmem:[#allocation4 + $0x40] sm:$0xff] %vm461_vm0, %v437_v52  ;;  %v626_v2 = vld [vmem:[#allocation3 + $0x28] sm:$0xff] }
  0xeb   : > { %468 = vst.msk [vmem:[#allocation3 + $0x30] sm:$0xff] %vm461_vm0, %v383_v1 }
  0xf1   : > { %v531_v54 = vpop.f32.mrf.mxu1  ;;  %v386_v4 = vpop.f32.mrf.mxu0 }
  0xf2   : > { %538 = vst.msk [vmem:[#allocation2] sm:$0xff] %vm461_vm0, %v531_v54  ;;  %560 = vrot.lane.b32.xlu2 %v531_v54, %s2036_s1  ;;  %542 = vrot.lane.b32.xlu0 %v531_v54, %s2037_s2  ;;  %v627_v7 = vld [vmem:[#allocation3 + $0x30] sm:$0xff] }
  0xf3   : > { %469 = vst.msk [vmem:[#allocation3 + $0x38] sm:$0xff] %vm461_vm0, %v386_v4 }
  0xf9   : > { %v534_v56 = vpop.f32.mrf.mxu1  ;;  %v605_v57 = vld [vmem:[#allocation2] sm:$0xff]  ;;  %v389_v5 = vpop.f32.mrf.mxu0 }
  0xfa   : > { %539 = vst.msk [vmem:[#allocation2 + $0x8] sm:$0xff] %vm461_vm0, %v534_v56  ;;  %569 = vrot.lane.b32.xlu2 %v531_v54, %s2038_s3  ;;  %551 = vrot.lane.b32.xlu0 %v531_v54, %s2039_s26  ;;  %v628_v6 = vld [vmem:[#allocation3 + $0x38] sm:$0xff] }
  0xfb   : > { %544 = vrot.lane.b32.xlu1 %v534_v56, %s2037_s2  ;;  %1567 = vmatmul.msk.f32.vlgmr.msra.gmra.mxu2 %vm461_vm0, %v605_v57  ;;  %470 = vst.msk [vmem:[#allocation3 + $0x40] sm:$0xff] %vm461_vm0, %v389_v5  ;;  %s1953_s2 = sshra.s32 %s1436_s13, 4  ;;  %s1954_s2 = int_to_ptr.hbm [resolvable:$true] %s1953_s2 }
  0xfc   : > { %731 = vmatpush.msra.mxu2 %v626_v2  ;;  %760 = vmatpush.msra.mxu3 %v628_v6  ;;  %s1955_s21 = scalar_lea.hbm %s1954_s2, 16  ;;  %p1960_p10 = scmp.lt.s32.totalorder %s1954_s2, %s2535_s5 }
  0xfd   : > { %p1956_p1 = scmp.ne.s32.totalorder %s1954_s2, %s1955_s21  ;;  %p1961_p12 = scmp.lt.s32.totalorder %s1959_s15, %s1955_s21 }
  0xfe   : > { %732 = vmatpush.msra.mxu2 %v625_v3  ;;  %761 = vmatpush.msra.mxu3 %v627_v7 }
  0xff   : > { %p1957_p4 = pnand %p1956_p1, %p2180_p5  ;;  %p1962_p13 = por %p1961_p12, %p1960_p10 }
 0x100   : > { %v446_v53 = vpop.f32.mrf.mxu3 }
 0x101   : > { %v606_v62 = vld [vmem:[#allocation2 + $0x8] sm:$0xff]  ;;  %v392_v8 = vpop.f32.mrf.mxu0  ;;  %489 = vst.msk [vmem:[#allocation4 + $0x58] sm:$0xff] %vm461_vm0, %v446_v53  ;;  %p1958_p8 = pneg %p1957_p4 }
 0x102   : > { %596 = vrot.lane.b32.xlu2 %v531_v54, %s2040_s28  ;;  %562 = vrot.lane.b32.xlu0 %v534_v56, %s2036_s1  ;;  %471 = vst.msk [vmem:[#allocation3 + $0x48] sm:$0xff] %vm461_vm0, %v392_v8  ;;  %v629_v37 = vld [vmem:[#allocation3 + $0x40] sm:$0xff]  ;;  %s1419_s1 = scalar_lea.sflag [#allocation7], %s2203_s10 }
 0x103   : > { %553 = vrot.lane.b32.xlu1 %v534_v56, %s2039_s26  ;;  %1568 = vmatmul.msk.f32.gmra.mxu2 %vm461_vm0, %v606_v62  ;;  %p1963_p0 = pnand %p1962_p13, %p1958_p8 }
 0x108   : > { %v449_v62 = vpop.f32.mrf.mxu3 }
 0x109   : > { %v395_v10 = vpop.f32.mrf.mxu0  ;;  %v630_v36 = vld [vmem:[#allocation3 + $0x48] sm:$0xff]  ;;  %490 = vst.msk [vmem:[#allocation4 + $0x60] sm:$0xff] %vm461_vm0, %v449_v62 }
 0x10a   : > { %598 = vrot.lane.b32.xlu2 %v534_v56, %s2040_s28  ;;  %578 = vrot.lane.b32.xlu0 %v531_v54, %s2041_s8  ;;  %472 = vst.msk [vmem:[#allocation3 + $0x50] sm:$0xff] %vm461_vm0, %v395_v10 }
 0x10b   : > { %571 = vrot.lane.b32.xlu1 %v534_v56, %s2038_s3 }
 0x110   : > { %v452_v63 = vpop.f32.mrf.mxu3 }
 0x111   : > { %v398_v12 = vpop.f32.mrf.mxu0  ;;  %v631_v31 = vld [vmem:[#allocation3 + $0x50] sm:$0xff]  ;;  %491 = vst.msk [vmem:[#allocation4 + $0x68] sm:$0xff] %vm461_vm0, %v452_v63 }
 0x112   : > { %580 = vrot.lane.b32.xlu0 %v534_v56, %s2041_s8  ;;  %473 = vst.msk [vmem:[#allocation3 + $0x58] sm:$0xff] %vm461_vm0, %v398_v12 }
 0x113   : > { %587 = vrot.lane.b32.xlu1 %v531_v54, %s2042_s16 }
 0x118   : > { %v455_v0 = vpop.f32.mrf.mxu3 }
 0x119   : > { %v401_v14 = vpop.f32.mrf.mxu0  ;;  %v632_v27 = vld [vmem:[#allocation3 + $0x58] sm:$0xff]  ;;  %492 = vst.msk [vmem:[#allocation4 + $0x70] sm:$0xff] %vm461_vm0, %v455_v0 }
 0x11a   : > { %474 = vst.msk [vmem:[#allocation3 + $0x60] sm:$0xff] %vm461_vm0, %v401_v14 }
 0x11b   : > { %589 = vrot.lane.b32.xlu1 %v534_v56, %s2042_s16 }
 0x120   : > { %v458_v1 = vpop.f32.mrf.mxu3 }
 0x121   : > { %v404_v16 = vpop.f32.mrf.mxu0  ;;  %v633_v19 = vld [vmem:[#allocation3 + $0x60] sm:$0xff]  ;;  %493 = vst.msk [vmem:[#allocation4 + $0x78] sm:$0xff] %vm461_vm0, %v458_v1 }
 0x122   : > { %475 = vst.msk [vmem:[#allocation3 + $0x68] sm:$0xff] %vm461_vm0, %v404_v16 }
 0x129   : > { %v634_v18 = vld [vmem:[#allocation3 + $0x68] sm:$0xff]  ;;  %v407_v21 = vpop.f32.mrf.mxu0 }
 0x12a   : > { %847 = vmatpush.msra.mxu1 %v634_v18  ;;  %476 = vst.msk [vmem:[#allocation3 + $0x70] sm:$0xff] %vm461_vm0, %v407_v21 }
 0x12c   : > { %848 = vmatpush.msra.mxu1 %v633_v19 }
 0x131   : > { %v410_v24 = vpop.f32.mrf.mxu0  ;;  %v635_v51 = vld [vmem:[#allocation3 + $0x70] sm:$0xff] }
 0x132   : > { %477 = vst.msk [vmem:[#allocation3 + $0x78] sm:$0xff] %vm461_vm0, %v410_v24 }
 0x139   : > { %v636_v46 = vld [vmem:[#allocation3 + $0x78] sm:$0xff] }
 0x14c   : > { %v561_v17 = vpop.permute.xlu2 %560 }
 0x14d   : > { %567 = vst.msk [vmem:[#allocation2 + $0x30] sm:$0xff] %vm461_vm0, %v561_v17 }
 0x154   : > { %v570_v20 = vpop.permute.xlu2 %569  ;;  %v611_v41 = vld [vmem:[#allocation2 + $0x30] sm:$0xff] }
 0x155   : > { %576 = vst.msk [vmem:[#allocation2 + $0x40] sm:$0xff] %vm461_vm0, %v570_v20 }
 0x15c   : > { %v597_v23 = vpop.permute.xlu2 %596  ;;  %v613_v49 = vld [vmem:[#allocation2 + $0x40] sm:$0xff] }
 0x15d   : > { %603 = vst.msk [vmem:[#allocation2 + $0x70] sm:$0xff] %vm461_vm0, %v597_v23 }
 0x164   : > { %v543_v25 = vpop.permute.xlu0 %542  ;;  %v599_v26 = vpop.permute.xlu2 %598  ;;  %v619_v60 = vld [vmem:[#allocation2 + $0x70] sm:$0xff] }
 0x165   : > { %549 = vst.msk [vmem:[#allocation2 + $0x10] sm:$0xff] %vm461_vm0, %v543_v25 }
 0x166   : > { %604 = vst.msk [vmem:[#allocation2 + $0x78] sm:$0xff] %vm461_vm0, %v599_v26 }
 0x16c   : > { %v552_v28 = vpop.permute.xlu0 %551  ;;  %v607_v29 = vld [vmem:[#allocation2 + $0x10] sm:$0xff] }
 0x16d   : > { %558 = vst.msk [vmem:[#allocation2 + $0x20] sm:$0xff] %vm461_vm0, %v552_v28  ;;  %v545_v30 = vpop.permute.xlu1 %544  ;;  %1569 = vmatmul.msk.f32.vlgmr.msrb.gmra.mxu3 %vm461_vm0, %v607_v29  ;;  %v620_v61 = vld [vmem:[#allocation2 + $0x78] sm:$0xff] }
 0x16e   : > { %550 = vst.msk [vmem:[#allocation2 + $0x18] sm:$0xff] %vm461_vm0, %v545_v30  ;;  %818 = vmatpush.msrb.mxu3 %v632_v27 }
 0x170   : > { %819 = vmatpush.msrb.mxu3 %v631_v31 }
 0x174   : > { %v563_v32 = vpop.permute.xlu0 %562  ;;  %v609_v33 = vld [vmem:[#allocation2 + $0x20] sm:$0xff] }
 0x175   : > { %568 = vst.msk [vmem:[#allocation2 + $0x38] sm:$0xff] %vm461_vm0, %v563_v32  ;;  %v554_v34 = vpop.permute.xlu1 %553  ;;  %v608_v35 = vld [vmem:[#allocation2 + $0x18] sm:$0xff]  ;;  %1571 = vmatmul.msk.f32.vlgmr.msra.gmra.mxu2 %vm461_vm0, %v609_v33 }
 0x176   : > { %559 = vst.msk [vmem:[#allocation2 + $0x28] sm:$0xff] %vm461_vm0, %v554_v34  ;;  %1570 = vmatmul.msk.f32.gmra.mxu3 %vm461_vm0, %v608_v35  ;;  %789 = vmatpush.msra.mxu2 %v630_v36 }
 0x178   : > { %790 = vmatpush.msra.mxu2 %v629_v37 }
 0x17c   : > { %v579_v38 = vpop.permute.xlu0 %578  ;;  %v612_v48 = vld [vmem:[#allocation2 + $0x38] sm:$0xff] }
 0x17d   : > { %585 = vst.msk [vmem:[#allocation2 + $0x50] sm:$0xff] %vm461_vm0, %v579_v38  ;;  %v572_v39 = vpop.permute.xlu1 %571  ;;  %v610_v40 = vld [vmem:[#allocation2 + $0x28] sm:$0xff] }
 0x17e   : > { %577 = vst.msk [vmem:[#allocation2 + $0x48] sm:$0xff] %vm461_vm0, %v572_v39  ;;  %v2277_v42 = vpop.f32.mrf.mxu2  ;;  %1572 = vmatmul.msk.f32.gmra.mxu2 %vm461_vm0, %v610_v40  ;;  %1573 = vmatmul.msk.f32.vlgmr.msra.gmra.mxu3 %vm461_vm0, %v611_v41  ;;  %v332_v40 = vld [vmem:[#allocation10 + $0x80] sm:$0xff]  ;;  %v333_v41 = vld [vmem:[#allocation10 + $0x88] sm:$0xff] }
 0x17f   : > { %v885_v43 = vsel %vm461_vm0, %v2277_v42, -inf  ;;  %412 = vmatmul.f32.gmra.mxu0 %v332_v40 }
 0x180   : > { %886 = vmax.xlane.f32.xlu1 %v885_v43 }
 0x184   : > { %v581_v45 = vpop.permute.xlu0 %580  ;;  %v615_v56 = vld [vmem:[#allocation2 + $0x50] sm:$0xff] }
 0x185   : > { %586 = vst.msk [vmem:[#allocation2 + $0x58] sm:$0xff] %vm461_vm0, %v581_v45  ;;  %v588_v47 = vpop.permute.xlu1 %587  ;;  %v614_v55 = vld [vmem:[#allocation2 + $0x48] sm:$0xff] }
 0x186   : > { %594 = vst.msk [vmem:[#allocation2 + $0x60] sm:$0xff] %vm461_vm0, %v588_v47  ;;  %v2286_v50 = vpop.f32.mrf.mxu2  ;;  %1574 = vmatmul.msk.f32.gmra.mxu3 %vm461_vm0, %v612_v48  ;;  %1575 = vmatmul.msk.f32.vlgmr.msra.gmra.mxu2 %vm461_vm0, %v613_v49 }
 0x187   : > { %876 = vmatpush.msra.mxu2 %v636_v46  ;;  %v888_v52 = vsel %vm461_vm0, %v2286_v50, -inf  ;;  %415 = vmatmul.f32.gmra.mxu0 %v333_v41 }
 0x188   : > { %889 = vmax.xlane.f32.xlu2 %v888_v52 }
 0x189   : > { %877 = vmatpush.msra.mxu2 %v635_v51 }
 0x18c   : > { %v616_v58 = vld [vmem:[#allocation2 + $0x58] sm:$0xff] }
 0x18d   : > { %v590_v54 = vpop.permute.xlu1 %589  ;;  %v617_v57 = vld [vmem:[#allocation2 + $0x60] sm:$0xff] }
 0x18e   : > { %595 = vst.msk [vmem:[#allocation2 + $0x68] sm:$0xff] %vm461_vm0, %v590_v54  ;;  %1576 = vmatmul.msk.f32.gmra.mxu2 %vm461_vm0, %v614_v55  ;;  %1577 = vmatmul.msk.f32.vlgmr.msrb.gmra.mxu3 %vm461_vm0, %v615_v56 }
 0x18f   : > { %1579 = vmatmul.msk.f32.vlgmr.msra.gmra.mxu1 %vm461_vm0, %v617_v57 }
 0x195   : > { %v618_v59 = vld [vmem:[#allocation2 + $0x68] sm:$0xff] }
 0x196   : > { %1578 = vmatmul.msk.f32.gmra.mxu3 %vm461_vm0, %v616_v58  ;;  %1581 = vmatmul.msk.f32.vlgmr.msra.gmra.mxu2 %vm461_vm0, %v619_v60 }
 0x197   : > { %1580 = vmatmul.msk.f32.gmra.mxu1 %vm461_vm0, %v618_v59 }
 0x19e   : > { %1582 = vmatmul.msk.f32.gmra.mxu2 %vm461_vm0, %v620_v61 }
 0x1f0   : > { %v705_v2 = vpop.f32.mrf.mxu3 }
 0x1f1   : > { %v891_v3 = vsel %vm461_vm0, %v705_v2, -inf }
 0x1f2   : > { %892 = vmax.xlane.f32.xlu2 %v891_v3 }
 0x1f3   : > { %v887_v19 = vpop.xlane.xlu1 %886 }
 0x1f4   : > { %v933_v22 = vsub.f32 %v2277_v42, %v887_v19 }
 0x1f6   : > { %v949_v29 = vmul.f32 1.442695, %v933_v22 }
 0x1f8   : > { %v2306_v4 = vpop.f32.mrf.mxu2  ;;  %1755 = vpow2.f32 %v949_v29 }
 0x1f9   : > { %v2308_v5 = vpop.f32.mrf.mxu3  ;;  %v897_v12 = vsel %vm461_vm0, %v2306_v4, -inf }
 0x1fa   : > { %v894_v6 = vsel %vm461_vm0, %v2308_v5, -inf }
 0x1fb   : > { %895 = vmax.xlane.f32.xlu0 %v894_v6  ;;  %v890_v20 = vpop.xlane.xlu2 %889 }
 0x1fc   : > { %v934_v25 = vsub.f32 %v2286_v50, %v890_v20 }
 0x1fe   : > { %v951_v30 = vmul.f32 1.442695, %v934_v25  ;;  %v2358_v35 = vpop.eup %1755 }
 0x1ff   : > { %v981_v37 = vsel %vm461_vm0, %v2358_v35, 0.0 }
 0x200   : > { %1757 = vpow2.f32 %v951_v30 }
 0x201   : > { %v2312_v7 = vpop.f32.mrf.mxu2  ;;  %v2314_v8 = vpop.f32.mrf.mxu3 }
 0x202   : > { %v900_v9 = vsel %vm461_vm0, %v2312_v7, -inf  ;;  %v903_v17 = vsel %vm461_vm0, %v2314_v8, -inf }
 0x203   : > { %901 = vmax.xlane.f32.xlu1 %v900_v9 }
 0x206   : > { %v2360_v36 = vpop.eup %1757 }
 0x207   : > { %v984_v39 = vsel %vm461_vm0, %v2360_v36, 0.0 }
 0x209   : > { %v2318_v10 = vpop.f32.mrf.mxu3  ;;  %v2320_v11 = vpop.f32.mrf.mxu2 }
 0x20a   : > { %v906_v13 = vsel %vm461_vm0, %v2318_v10, -inf  ;;  %v909_v26 = vsel %vm461_vm0, %v2320_v11, -inf }
 0x20b   : > { %898 = vmax.xlane.f32.xlu1 %v897_v12  ;;  %907 = vmax.xlane.f32.xlu2 %v906_v13 }
 0x20c   : > { %v2326_v14 = vpop.f32.mrf.mxu1 }
 0x20d   : > { %v921_v34 = vsel %vm461_vm0, %v2326_v14, -inf }
 0x211   : > { %v2328_v15 = vpop.f32.mrf.mxu2  ;;  %v2330_v16 = vpop.f32.mrf.mxu3 }
 0x212   : > { %v912_v18 = vsel %vm461_vm0, %v2328_v15, -inf  ;;  %v915_v32 = vsel %vm461_vm0, %v2330_v16, -inf }
 0x213   : > { %904 = vmax.xlane.f32.xlu2 %v903_v17  ;;  %913 = vmax.xlane.f32.xlu0 %v912_v18 }
 0x214   : > { %v2336_v21 = vpop.f32.mrf.mxu1 }
 0x215   : > { %v924_v28 = vsel %vm461_vm0, %v2336_v21, -inf }
 0x219   : > { %v2339_v23 = vpop.f32.mrf.mxu3  ;;  %v2341_v24 = vpop.f32.mrf.mxu2 }
 0x21a   : > { %v918_v27 = vsel %vm461_vm0, %v2339_v23, -inf  ;;  %v927_v38 = vsel %vm461_vm0, %v2341_v24, -inf }
 0x21b   : > { %910 = vmax.xlane.f32.xlu0 %v909_v26  ;;  %919 = vmax.xlane.f32.xlu1 %v918_v27 }
 0x21c   : > { %925 = vmax.xlane.f32.xlu2 %v924_v28 }
 0x221   : > { %v2350_v31 = vpop.f32.mrf.mxu2 }
 0x222   : > { %v930_v33 = vsel %vm461_vm0, %v2350_v31, -inf }
 0x223   : > { %916 = vmax.xlane.f32.xlu1 %v915_v32  ;;  %931 = vmax.xlane.f32.xlu0 %v930_v33 }
 0x224   : > { %922 = vmax.xlane.f32.xlu2 %v921_v34 }
 0x22b   : > { %982 = vadd.xlane.f32.xlu1 %v981_v37  ;;  %928 = vmax.xlane.f32.xlu0 %v927_v38 }
 0x22c   : > { %985 = vadd.xlane.f32.xlu2 %v984_v39 }
 0x265   : > { %v893_v42 = vpop.xlane.xlu2 %892 }
 0x266   : > { %v935_v43 = vsub.f32 %v705_v2, %v893_v42 }
 0x268   : > { %v953_v44 = vmul.f32 1.442695, %v935_v43 }
 0x26a   : > { %1759 = vpow2.f32 %v953_v44 }
 0x26e   : > { %v896_v45 = vpop.xlane.xlu0 %895 }
 0x26f   : > { %v936_v46 = vsub.f32 %v2308_v5, %v896_v45 }
 0x270   : > { %v2369_v47 = vpop.eup %1759 }
 0x271   : > { %v955_v48 = vmul.f32 1.442695, %v936_v46  ;;  %v987_v49 = vsel %vm461_vm0, %v2369_v47, 0.0 }
 0x272   : > { %988 = vadd.xlane.f32.xlu2 %v987_v49 }
 0x273   : > { %1761 = vpow2.f32 %v955_v48 }
 0x276   : > { %v902_v50 = vpop.xlane.xlu1 %901 }
 0x277   : > { %v938_v51 = vsub.f32 %v2312_v7, %v902_v50 }
 0x279   : > { %v2374_v52 = vpop.eup %1761  ;;  %v959_v53 = vmul.f32 1.442695, %v938_v51 }
 0x27a   : > { %v990_v54 = vsel %vm461_vm0, %v2374_v52, 0.0 }
 0x27b   : > { %1763 = vpow2.f32 %v959_v53  ;;  %991 = vadd.xlane.f32.xlu0 %v990_v54 }
 0x27e   : > { %v899_v55 = vpop.xlane.xlu1 %898  ;;  %v908_v56 = vpop.xlane.xlu2 %907 }
 0x27f   : > { %v937_v57 = vsub.f32 %v2306_v4, %v899_v55  ;;  %v940_v58 = vsub.f32 %v2318_v10, %v908_v56 }
 0x281   : > { %v2380_v59 = vpop.eup %1763  ;;  %v957_v60 = vmul.f32 1.442695, %v937_v57  ;;  %v963_v61 = vmul.f32 1.442695, %v940_v58  ;;  %v413_v58 = vpop.f32.mrf.mxu0 }
 0x282   : > { %v996_v62 = vsel %vm461_vm0, %v2380_v59, 0.0  ;;  %478 = vst.msk [vmem:[#allocation4] sm:$0xff] %vm461_vm0, %v413_v58 }
 0x283   : > { %1765 = vpow2.f32 %v957_v60  ;;  %997 = vadd.xlane.f32.xlu2 %v996_v62 }
 0x284   : > { %1767 = vpow2.f32 %v963_v61 }
 0x286   : > { %v905_v63 = vpop.xlane.xlu2 %904  ;;  %v914_v0 = vpop.xlane.xlu0 %913 }
 0x287   : > { %v939_v1 = vsub.f32 %v2314_v8, %v905_v63  ;;  %v942_v2 = vsub.f32 %v2328_v15, %v914_v0 }
 0x289   : > { %v2386_v3 = vpop.eup %1765  ;;  %v961_v4 = vmul.f32 1.442695, %v939_v1  ;;  %v967_v5 = vmul.f32 1.442695, %v942_v2  ;;  %v416_v60 = vpop.f32.mrf.mxu0  ;;  %v637_v61 = vld [vmem:[#allocation4] sm:$0xff] }
 0x28a   : > { %v2388_v6 = vpop.eup %1767  ;;  %v993_v7 = vsel %vm461_vm0, %v2386_v3, 0.0  ;;  %479 = vst.msk [vmem:[#allocation4 + $0x8] sm:$0xff] %vm461_vm0, %v416_v60 }
 0x28b   : > { %1769 = vpow2.f32 %v961_v4  ;;  %994 = vadd.xlane.f32.xlu2 %v993_v7  ;;  %v1002_v9 = vsel %vm461_vm0, %v2388_v6, 0.0 }
 0x28c   : > { %1771 = vpow2.f32 %v967_v5  ;;  %1003 = vadd.xlane.f32.xlu0 %v1002_v9  ;;  %v639_v9 = vld [vmem:[#allocation4 + $0x10] sm:$0xff] }
 0x28e   : > { %v911_v10 = vpop.xlane.xlu0 %910  ;;  %v920_v8 = vpop.xlane.xlu1 %919 }
 0x28f   : > { %v941_v12 = vsub.f32 %v2320_v11, %v911_v10  ;;  %v944_v13 = vsub.f32 %v2339_v23, %v920_v8  ;;  %v926_v15 = vpop.xlane.xlu2 %925 }
 0x290   : > { %v946_v17 = vsub.f32 %v2336_v21, %v926_v15 }
 0x291   : > { %v2397_v18 = vpop.eup %1769  ;;  %v965_v19 = vmul.f32 1.442695, %v941_v12  ;;  %v971_v20 = vmul.f32 1.442695, %v944_v13  ;;  %v640_v13 = vld [vmem:[#allocation4 + $0x18] sm:$0xff] }
 0x292   : > { %v2399_v22 = vpop.eup %1771  ;;  %v975_v25 = vmul.f32 1.442695, %v946_v17  ;;  %v999_v26 = vsel %vm461_vm0, %v2397_v18, 0.0 }
 0x293   : > { %1773 = vpow2.f32 %v965_v19  ;;  %v1008_v27 = vsel %vm461_vm0, %v2399_v22, 0.0 }
 0x294   : > { %1775 = vpow2.f32 %v971_v20  ;;  %1009 = vadd.xlane.f32.xlu1 %v1008_v27  ;;  %1000 = vadd.xlane.f32.xlu0 %v999_v26 }
 0x295   : > { %1777 = vpow2.f32 %v975_v25 }
 0x296   : > { %v917_v11 = vpop.xlane.xlu1 %916  ;;  %v932_v21 = vpop.xlane.xlu0 %931 }
 0x297   : > { %v943_v23 = vsub.f32 %v2330_v16, %v917_v11  ;;  %v923_v28 = vpop.xlane.xlu2 %922  ;;  %v948_v29 = vsub.f32 %v2350_v31, %v932_v21  ;;  %v642_v21 = vld [vmem:[#allocation4 + $0x28] sm:$0xff] }
 0x298   : > { %v945_v30 = vsub.f32 %v2326_v14, %v923_v28 }
 0x299   : > { %v2408_v32 = vpop.eup %1773  ;;  %v969_v33 = vmul.f32 1.442695, %v943_v23  ;;  %v979_v34 = vmul.f32 1.442695, %v948_v29  ;;  %v643_v23 = vld [vmem:[#allocation4 + $0x30] sm:$0xff] }
 0x29a   : > { %v2410_v37 = vpop.eup %1775  ;;  %v973_v38 = vmul.f32 1.442695, %v945_v30  ;;  %v1005_v39 = vsel %vm461_vm0, %v2408_v32, 0.0 }
 0x29b   : > { %v2414_v40 = vpop.eup %1777  ;;  %1779 = vpow2.f32 %v969_v33  ;;  %v1014_v16 = vsel %vm461_vm0, %v2410_v37, 0.0 }
 0x29c   : > { %1781 = vpow2.f32 %v973_v38  ;;  %1006 = vadd.xlane.f32.xlu1 %v1005_v39  ;;  %1015 = vadd.xlane.f32.xlu2 %v1014_v16  ;;  %v1020_v14 = vsel %vm461_vm0, %v2414_v40, 0.0  ;;  %v645_v16 = vld [vmem:[#allocation4 + $0x40] sm:$0xff] }
 0x29d   : > { %1783 = vpow2.f32 %v979_v34  ;;  %1021 = vadd.xlane.f32.xlu0 %v1020_v14  ;;  %v644_v14 = vld [vmem:[#allocation4 + $0x38] sm:$0xff] }
 0x29e   : > { %v929_v31 = vpop.xlane.xlu0 %928  ;;  %v983_v41 = vpop.xlane.xlu1 %982 }
 0x29f   : > { %v986_v42 = vpop.xlane.xlu2 %985  ;;  %v947_v43 = vsub.f32 %v2341_v24, %v929_v31 }
 0x2a0   : > { %1785 = vrcp.f32 %v986_v42 }
 0x2a1   : > { %v2421_v44 = vpop.eup %1779  ;;  %v977_v45 = vmul.f32 1.442695, %v947_v43  ;;  %1787 = vrcp.f32 %v983_v41 }
 0x2a2   : > { %v2423_v46 = vpop.eup %1781  ;;  %v1011_v48 = vsel %vm461_vm0, %v2421_v44, 0.0 }
 0x2a3   : > { %v2427_v49 = vpop.eup %1783  ;;  %1789 = vpow2.f32 %v977_v45  ;;  %v1017_v50 = vsel %vm461_vm0, %v2423_v46, 0.0  ;;  %v646_v45 = vld [vmem:[#allocation4 + $0x48] sm:$0xff] }
 0x2a4   : > { %1012 = vadd.xlane.f32.xlu2 %v1011_v48  ;;  %v1026_v24 = vsel %vm461_vm0, %v2427_v49, 0.0  ;;  %v647_v48 = vld [vmem:[#allocation4 + $0x50] sm:$0xff] }
 0x2a5   : > { %1018 = vadd.xlane.f32.xlu0 %v1017_v50  ;;  %1027 = vadd.xlane.f32.xlu1 %v1026_v24  ;;  %v651_v24 = vld [vmem:[#allocation4 + $0x70] sm:$0xff] }
 0x2a6   : > { %v1786_v51 = vpop.eup %1785 }
 0x2a7   : > { %v1046_v53 = vmul.f32 %v1786_v51, %v2360_v36  ;;  %v1788_v54 = vpop.eup %1787  ;;  %v638_v36 = vld [vmem:[#allocation4 + $0x8] sm:$0xff] }
 0x2a8   : > { %v1045_v57 = vmul.f32 %v1788_v54, %v2358_v35  ;;  %v650_v51 = vld [vmem:[#allocation4 + $0x68] sm:$0xff] }
 0x2a9   : > { %v2434_v55 = vpop.eup %1789  ;;  %1583 = vmatpush.xpose.msk.msra.mxu3 %vm461_vm0, %v1046_v53  ;;  %v652_v53 = vld [vmem:[#allocation4 + $0x78] sm:$0xff] }
 0x2aa   : > { %v1023_v56 = vsel %vm461_vm0, %v2434_v55, 0.0 }
 0x2ad   : > { %1024 = vadd.xlane.f32.xlu1 %v1023_v56  ;;  %1584 = vmatpush.xpose.msk.msra.mxu3 %vm461_vm0, %v1045_v57 }
 0x2b0   : > { %1585 = vmatmul.msk.f32.vlgmr.msra.gmra.mxu3 %vm461_vm0, %v637_v61 }
 0x2b8   : > { %1586 = vmatmul.msk.f32.gmra.mxu3 %vm461_vm0, %v638_v36 }
 0x2e5   : > { %v989_v62 = vpop.xlane.xlu2 %988 }
 0x2ee   : > { %v992_v63 = vpop.xlane.xlu0 %991 }
 0x2ef   : > { %1791 = vrcp.f32 %v992_v63 }
 0x2f0   : > { %1793 = vrcp.f32 %v989_v62 }
 0x2f5   : > { %v1792_v35 = vpop.eup %1791 }
 0x2f6   : > { %v1048_v0 = vmul.f32 %v1792_v35, %v2374_v52  ;;  %v998_v1 = vpop.xlane.xlu2 %997  ;;  %v1794_v2 = vpop.eup %1793 }
 0x2f7   : > { %1795 = vrcp.f32 %v998_v1  ;;  %v1047_v4 = vmul.f32 %v1794_v2, %v2369_v47 }
 0x2f8   : > { %1587 = vmatpush.xpose.msk.msrb.mxu1 %vm461_vm0, %v1048_v0 }
 0x2fc   : > { %1588 = vmatpush.xpose.msk.msrb.mxu1 %vm461_vm0, %v1047_v4  ;;  %v1356_v4 = vld [vmem:[#allocation11 + $0x78] sm:$0xff] }
 0x2fd   : > { %v1796_v5 = vpop.eup %1795 }
 0x2fe   : > { %v995_v7 = vpop.xlane.xlu2 %994  ;;  %v1050_v10 = vmul.f32 %v1796_v5, %v2380_v59  ;;  %v641_v59 = vld [vmem:[#allocation4 + $0x20] sm:$0xff]  ;;  %v1355_v5 = vld [vmem:[#allocation11 + $0x70] sm:$0xff] }
 0x2ff   : > { %1797 = vrcp.f32 %v995_v7  ;;  %v1004_v8 = vpop.xlane.xlu0 %1003  ;;  %1589 = vmatmul.msk.f32.vlgmr.msrb.gmra.mxu1 %vm461_vm0, %v639_v9  ;;  %v1354_v7 = vld [vmem:[#allocation11 + $0x68] sm:$0xff] }
 0x300   : > { %1799 = vrcp.f32 %v1004_v8  ;;  %1591 = vmatpush.xpose.msk.msra.mxu2 %vm461_vm0, %v1050_v10  ;;  %v1353_v10 = vld [vmem:[#allocation11 + $0x60] sm:$0xff]  ;;  %v1352_v8 = vld [vmem:[#allocation11 + $0x58] sm:$0xff] }
 0x305   : > { %v1798_v52 = vpop.eup %1797 }
 0x306   : > { %v1800_v12 = vpop.eup %1799  ;;  %v1049_v15 = vmul.f32 %v1798_v52, %v2386_v3 }
 0x307   : > { %v1052_v47 = vmul.f32 %v1800_v12, %v2388_v6  ;;  %v1010_v17 = vpop.xlane.xlu1 %1009  ;;  %v1001_v19 = vpop.xlane.xlu0 %1000  ;;  %1590 = vmatmul.msk.f32.gmra.mxu1 %vm461_vm0, %v640_v13  ;;  %v1351_v12 = vld [vmem:[#allocation11 + $0x50] sm:$0xff]  ;;  %v1350_v13 = vld [vmem:[#allocation11 + $0x48] sm:$0xff] }
 0x308   : > { %1801 = vrcp.f32 %v1010_v17  ;;  %1592 = vmatpush.xpose.msk.msra.mxu2 %vm461_vm0, %v1049_v15  ;;  %v1349_v15 = vld [vmem:[#allocation11 + $0x40] sm:$0xff]  ;;  %v1347_v17 = vld [vmem:[#allocation11 + $0x30] sm:$0xff] }
 0x309   : > { %1803 = vrcp.f32 %v1001_v19  ;;  %1595 = vmatpush.xpose.msk.msrb.mxu3 %vm461_vm0, %v1052_v47  ;;  %v1348_v47 = vld [vmem:[#allocation11 + $0x38] sm:$0xff]  ;;  %v1346_v19 = vld [vmem:[#allocation11 + $0x28] sm:$0xff] }
 0x30b   : > { %1593 = vmatmul.msk.f32.vlgmr.msra.gmra.mxu2 %vm461_vm0, %v641_v59  ;;  %v1345_v59 = vld [vmem:[#allocation11 + $0x20] sm:$0xff] }
 0x30e   : > { %v1802_v20 = vpop.eup %1801 }
 0x30f   : > { %v1804_v25 = vpop.eup %1803  ;;  %v1054_v26 = vmul.f32 %v1802_v20, %v2399_v22  ;;  %v1007_v3 = vpop.xlane.xlu1 %1006  ;;  %v1344_v20 = vld [vmem:[#allocation11 + $0x18] sm:$0xff] }
 0x310   : > { %v1016_v27 = vpop.xlane.xlu2 %1015  ;;  %1805 = vrcp.f32 %v1007_v3  ;;  %v1022_v6 = vpop.xlane.xlu0 %1021  ;;  %v1051_v11 = vmul.f32 %v1804_v25, %v2397_v18  ;;  %v1343_v25 = vld [vmem:[#allocation11 + $0x10] sm:$0xff]  ;;  %v1341_v3 = vld [vmem:[#allocation11] sm:$0xff] }
 0x311   : > { %1807 = vrcp.f32 %v1016_v27  ;;  %1599 = vmatpush.xpose.msk.msra.mxu1 %vm461_vm0, %v1054_v26  ;;  %v1342_v26 = vld [vmem:[#allocation11 + $0x8] sm:$0xff]  ;;  %v1754_v27 = vld [vmem:[%s2534_s4] ss:$0 sm:$0xff] }
 0x312   : > { %1809 = vrcp.f32 %v1022_v6  ;;  %1596 = vmatpush.xpose.msk.msrb.mxu3 %vm461_vm0, %v1051_v11 }
 0x313   : > { %1594 = vmatmul.msk.f32.gmra.mxu2 %vm461_vm0, %v642_v21 }
 0x315   : > { %1597 = vmatmul.msk.f32.vlgmr.msrb.gmra.mxu3 %vm461_vm0, %v643_v23 }
 0x316   : > { %v1806_v28 = vpop.eup %1805 }
 0x317   : > { %v1808_v22 = vpop.eup %1807  ;;  %v1053_v30 = vmul.f32 %v1806_v28, %v2408_v32 }
 0x318   : > { %v1013_v29 = vpop.xlane.xlu2 %1012  ;;  %v1810_v33 = vpop.eup %1809  ;;  %v1056_v38 = vmul.f32 %v1808_v22, %v2410_v37 }
 0x319   : > { %1811 = vrcp.f32 %v1013_v29  ;;  %v1028_v18 = vpop.xlane.xlu1 %1027  ;;  %v1019_v34 = vpop.xlane.xlu0 %1018  ;;  %v1058_v39 = vmul.f32 %v1810_v33, %v2414_v40  ;;  %1600 = vmatpush.xpose.msk.msra.mxu1 %vm461_vm0, %v1053_v30 }
 0x31a   : > { %1813 = vrcp.f32 %v1028_v18  ;;  %1603 = vmatpush.xpose.msk.msra.mxu2 %vm461_vm0, %v1056_v38 }
 0x31b   : > { %1815 = vrcp.f32 %v1019_v34  ;;  %1607 = vmatpush.xpose.msk.msra.mxu3 %vm461_vm0, %v1058_v39 }
 0x31c   : > { %1601 = vmatmul.msk.f32.vlgmr.msra.gmra.mxu1 %vm461_vm0, %v645_v16 }
 0x31d   : > { %1598 = vmatmul.msk.f32.gmra.mxu3 %vm461_vm0, %v644_v14 }
 0x31f   : > { %v1812_v32 = vpop.eup %1811 }
 0x320   : > { %v1814_v31 = vpop.eup %1813  ;;  %v1055_v37 = vmul.f32 %v1812_v32, %v2421_v44  ;;  %v649_v44 = vld [vmem:[#allocation4 + $0x60] sm:$0xff] }
 0x321   : > { %v1816_v41 = vpop.eup %1815  ;;  %v1060_v40 = vmul.f32 %v1814_v31, %v2427_v49  ;;  %v1025_v42 = vpop.xlane.xlu1 %1024 }
 0x322   : > { %v1057_v43 = vmul.f32 %v1816_v41, %v2423_v46  ;;  %1817 = vrcp.f32 %v1025_v42  ;;  %1604 = vmatpush.xpose.msk.msra.mxu2 %vm461_vm0, %v1055_v37  ;;  %v648_v46 = vld [vmem:[#allocation4 + $0x58] sm:$0xff] }
 0x323   : > { %1611 = vmatpush.xpose.msk.msrb.mxu1 %vm461_vm0, %v1060_v40 }
 0x324   : > { %1608 = vmatpush.xpose.msk.msra.mxu3 %vm461_vm0, %v1057_v43  ;;  %1602 = vmatmul.msk.f32.gmra.mxu1 %vm461_vm0, %v646_v45 }
 0x325   : > { %1605 = vmatmul.msk.f32.vlgmr.msra.gmra.mxu2 %vm461_vm0, %v647_v48 }
 0x327   : > { %1609 = vmatmul.msk.f32.vlgmr.msra.gmra.mxu3 %vm461_vm0, %v649_v44 }
 0x328   : > { %v1818_v49 = vpop.eup %1817 }
 0x329   : > { %v1059_v50 = vmul.f32 %v1818_v49, %v2434_v55 }
 0x32b   : > { %1612 = vmatpush.xpose.msk.msrb.mxu1 %vm461_vm0, %v1059_v50 }
 0x32d   : > { %1606 = vmatmul.msk.f32.gmra.mxu2 %vm461_vm0, %v648_v46 }
 0x32e   : > { %1613 = vmatmul.msk.f32.vlgmr.msrb.gmra.mxu1 %vm461_vm0, %v651_v24 }
 0x32f   : > { %1610 = vmatmul.msk.f32.gmra.mxu3 %vm461_vm0, %v650_v51 }
 0x333   : > { %v1090_v54 = vpop.f32.mrf.mxu3 }
 0x336   : > { %1614 = vmatmul.msk.f32.gmra.mxu1 %vm461_vm0, %v652_v53 }
 0x33b   : > { %v1093_v57 = vpop.f32.mrf.mxu3 }
 0x37c   : > { %v1125_v56 = vpop.f32.mrf.mxu1 }
 0x384   : > { %v1128_v58 = vpop.f32.mrf.mxu1 }
 0x38e   : > { %v1160_v61 = vpop.f32.mrf.mxu2 }
 0x396   : > { %v1163_v63 = vpop.f32.mrf.mxu2 }
 0x398   : > { %v1195_v60 = vpop.f32.mrf.mxu3 }
 0x399   : > { %v1230_v55 = vpop.f32.mrf.mxu1 }
 0x3a0   : > { %v1198_v62 = vpop.f32.mrf.mxu3 }
 0x3a1   : > { %v1233_v36 = vpop.f32.mrf.mxu1 }
 0x3a8   : > { %v1265_v1 = vpop.f32.mrf.mxu2 }
 0x3aa   : > { %v1300_v0 = vpop.f32.mrf.mxu3 }
 0x3ab   : > { %v1335_v35 = vpop.f32.mrf.mxu1 }
 0x3b0   : > { %v1268_v52 = vpop.f32.mrf.mxu2 }
 0x3b2   : > { %v1303_v9 = vpop.f32.mrf.mxu3 }
 0x3b3   : > { %v1338_v2 = vpop.f32.mrf.mxu1 }
 0x3b4   : > { %1631 = vmatpush.lsf.msrb.mxu2 %v1338_v2 }
 0x3b6   : > { %1393 = vmatpush.msra.mxu2 %v1356_v4 }
 0x3b8   : > { %1632 = vmatpush.lsf.msrb.mxu2 %v1335_v35 }
 0x3ba   : > { %1394 = vmatpush.msra.mxu2 %v1355_v5 }
 0x3bc   : > { %1633 = vmatpush.lsf.msrb.mxu2 %v1303_v9 }
 0x3be   : > { %1395 = vmatpush.msra.mxu2 %v1354_v7 }
 0x3c0   : > { %1634 = vmatpush.lsf.msrb.mxu2 %v1300_v0 }
 0x3c2   : > { %1396 = vmatpush.msra.mxu2 %v1353_v10 }
 0x3c4   : > { %1635 = vmatpush.lsf.msrb.mxu2 %v1268_v52 }
 0x3c6   : > { %1397 = vmatpush.msra.mxu2 %v1352_v8 }
 0x3c8   : > { %1636 = vmatpush.lsf.msrb.mxu2 %v1265_v1 }
 0x3ca   : > { %1398 = vmatpush.msra.mxu2 %v1351_v12 }
 0x3cc   : > { %1637 = vmatpush.lsf.msrb.mxu2 %v1233_v36 }
 0x3ce   : > { %1399 = vmatpush.msra.mxu2 %v1350_v13 }
 0x3d0   : > { %1638 = vmatpush.lsf.msrb.mxu2 %v1230_v55 }
 0x3d2   : > { %1400 = vmatpush.msra.mxu2 %v1349_v15 }
 0x3d4   : > { %1639 = vmatpush.lsf.msrb.mxu2 %v1198_v62 }
 0x3d6   : > { %1401 = vmatpush.msra.mxu2 %v1348_v47 }
 0x3d8   : > { %1640 = vmatpush.lsf.msrb.mxu2 %v1195_v60 }
 0x3da   : > { %1402 = vmatpush.msra.mxu2 %v1347_v17 }
 0x3dc   : > { %1641 = vmatpush.lsf.msrb.mxu2 %v1163_v63 }
 0x3de   : > { %1403 = vmatpush.msra.mxu2 %v1346_v19 }
 0x3e0   : > { %1642 = vmatpush.lsf.msrb.mxu2 %v1160_v61 }
 0x3e2   : > { %1404 = vmatpush.msra.mxu2 %v1345_v59 }
 0x3e4   : > { %1643 = vmatpush.lsf.msrb.mxu2 %v1128_v58 }
 0x3e6   : > { %1405 = vmatpush.msra.mxu2 %v1344_v20 }
 0x3e8   : > { %1644 = vmatpush.lsf.msrb.mxu2 %v1125_v56 }
 0x3ea   : > { %1406 = vmatpush.msra.mxu2 %v1343_v25 }
 0x3ec   : > { %1645 = vmatpush.lsf.msrb.mxu2 %v1093_v57 }
 0x3ee   : > { %1407 = vmatpush.msra.mxu2 %v1342_v26 }
 0x3f0   : > { %1646 = vmatpush.lsf.msrb.mxu2 %v1090_v54 }
 0x3f1   : > { %1647 = vllmr.2.mxu2 }
 0x3f2   : > { %1408 = vmatpush.msra.mxu2 %v1341_v3 }
 0x412   : > { %1648 = vmatmul.lmr.bf16.vlgmr.msra.gmra.2.mxu2 }
 0x41a   : > { %1649 = vmatmul.lmr.bf16.gmra.2.mxu2 }
 0x495   : > { %v1410_v6 = vpop.f32.mrf.mxu2 }
 0x496   : > { %v1411_v11 = vadd.f32 %v1754_v27, %v1410_v6 }
 0x498   : > { %1416 = vst [vmem:[%s308_s27] sm:$0xff] %v1411_v11 }
 0x49d   : > { %v1413_v21 = vpop.f32.mrf.mxu2 }
 0x49e   : > { %v1414_v23 = vadd.f32 %v1754_v27, %v1413_v21 }
 0x4a0   : > { %1417 = vst [vmem:[%s308_s27 + $0x8] sm:$0xff] %v1414_v23 }
 0x4a1   : > { %1966 = shalt.err (!%p1963_p0)
}
 0x4a2   : > { %s2043_s10 = smov 128   ;;  %s2044_s16 = smov 8  }
 0x4a3   : > { %1664 = dma.vmem_to_hbm [thread:$0]  (%p2180_p5), %s1434_s14, 256, %s1436_s13, %s1419_s1, %s2043_s10, %s2043_s10, %s2044_s16  }
 0x4a4 PF: > { %s1450_s17 = sand.u32 1, %s2009_s18   ;;  %p1681_p3 = pnand %p1557_p11, %p2125_p6 }
 0x4a5   : > { %s1451_s24 = scalar_lea.sflag [#allocation7], %s1450_s17 }
 0x4a6   : > { %p1682_p7 = pneg %p1681_p3 }
 0x4a8   : > { %2004 = dma.done.wait (%p1682_p7), %s1451_s24, 256  }
 0x4a9   : > { %2006 = vsyncadd (%p1682_p7), %s1451_s24, 4294967040  ;;  %s23_s23 = sadd.s32 1, %s2029_s23   ;;  %s2554_s18 = smov %s2013_s19 }
 0x4aa   : > { %p20_p9 = scmp.ge.s32.totalorder %s23_s23, 4   ;;  %s2555_s19 = smov %s2017_s20 }
 0x4ab   : > { %s2556_s20 = smov %s2189_s25  ;;  %s2557_s21 = smov %s2025_s22 }
 0x4ac   : > { %s2558_s22 = smov %s2560_s7  ;;  %22 = sbr.rel (!%p20_p9) target bundleno = 12 (0xc), region = 109 }
 0x4b1   :  { %1457 = vsyncpa [#allocation6], 1 }
 0x4b2   :  { %1459 = vsyncpa [#allocation6 + $0x1], 1 }
 0x4b3   :  { %1460 = vsyncpa [#allocation9], 1 }
 0x4b4   :  { %1461 = vsyncpa [#allocation12], 1 }
 0x4b5   :  { %1462 = vsyncpa [#allocation7], 1 }
 0x4b6   :  { %1464 = vsyncpa [#allocation7 + $0x1], 1 }

// kernel: tpu_custom_call.1
= control target key start
LH: loop header
LB: loop body
LE: loop exit
PB: predicated region body
PF: predicated region fallthrough
CT: control target
= control target key end

     0   :  { %s2530_s0 = inlined_call_operand.hbm [shape: f32[2,16,128], index: 0, kind: input, shape index: {}]   ;;  %s2531_s1 = inlined_call_operand.hbm [shape: f32[128,128], index: 1, kind: input, shape index: {}]   ;;  %s2532_s2 = inlined_call_operand.hbm [shape: f32[256,128], index: 2, kind: input, shape index: {}]   ;;  %s2533_s3 = inlined_call_operand.hbm [shape: f32[128,128], index: 3, kind: input, shape index: {}]   ;;  %s2534_s4 = inlined_call_operand.vmem [shape: f32[1,128], index: 4, kind: input, shape index: {}]   ;;  %s2535_s5 = inlined_call_operand.hbm [shape: f32[2,16,128], index: 5, kind: output, shape index: {}]  }
   0x1   :  { %2538 = sst [smem:[#allocation18_spill]] %s2531_s1 }
   0x2   :  { %2539 = sst [smem:[#allocation19_spill]] %s2532_s2 }
   0x3   :  { %2540 = sst [smem:[#allocation20_spill]] %s2533_s3 }
   0x4   :  { %10 = vsyncpa [#allocation6], 0 }
   0x5   :  { %12 = vsyncpa [#allocation6 + $0x1], 0 }
   0x6   :  { %13 = vsyncpa [#allocation9], 0 }
   0x7   :  { %14 = vsyncpa [#allocation12], 0 }
   0x8   :  { %15 = vsyncpa [#allocation7], 0 }
   0x9   :  { %17 = vsyncpa [#allocation7 + $0x1], 0  ;;  %s2076_s18 = smov 0   ;;  %s2078_s19 = smov 0  }
   0xa   :  { %s2080_s20 = smov 0   ;;  %s2082_s21 = smov 0  }
   0xb   :  { %s2084_s22 = smov 0   ;;  %s2086_s23 = smov 0  }
   0xc LB: > { %s1551_s24 = sadd.s32 4294967295, %s2029_s23   ;;  %s1552_s25 = sadd.s32 4294967294, %s2029_s23   ;;  %s2029_s23 = sphi %s2086_s23, %s23_s23   ;;  %s2025_s22 = sphi %s2084_s22, %s2558_s22   ;;  %s2021_s21 = sphi %s2082_s21, %s2557_s21   ;;  %s2017_s20 = sphi %s2080_s20, %s2556_s20   ;;  %s2013_s19 = sphi %s2078_s19, %s2555_s19   ;;  %s2009_s18 = sphi %s2076_s18, %s2554_s18  }
   0xd   : > { %p55_p0 = scmp.ne.s32.totalorder %s2013_s19, %s2009_s18  ;;  %p2110_p1 = scmp.eq.s32.totalorder %s1551_s24, 0 }
   0xe   : > { %p2114_p2 = scmp.eq.s32.totalorder %s1551_s24, 1  ;;  %p171_p3 = scmp.eq.s32.totalorder %s1552_s25, 1 }
   0xf   : > { %p2120_p4 = por %p2110_p1, %p55_p0  ;;  %p1553_p5 = scmp.ge.s32.totalorder %s2029_s23, 1 }
  0x10   : > { %p2125_p6 = por %p171_p3, %p55_p0  ;;  %p178_p7 = scmp.lt.s32.totalorder %s2029_s23, 3 }
  0x11   : > { %s2545_s1 = sld [smem:[#allocation18_spill]]  ;;  %s2031_s9 = smov [#allocation8]  }
  0x12   : > { %p2133_p8 = pnand %p1553_p5, %p178_p7  ;;  %s191_s10 = sshll.u32 %s2031_s9, 4  ;;  %s192_s10 = int_to_ptr.vmem [resolvable:$true] %s191_s10 }
  0x13   : > { %p1557_p11 = scmp.ge.s32.totalorder %s2029_s23, 2  ;;  %s2548_s2 = sld [smem:[#allocation19_spill]] }
  0x14   : > { %p1666_p9 = pneg %p2133_p8  ;;  %s2536_s15 = smov 128  }
  0x15   : > { %s2537_s16 = smov 8   ;;  %s2034_s17 = smov [#allocation10]  }
  0x16   : > { %p2141_p10 = pnand %p1666_p9, %p2110_p1  ;;  %s205_s24 = sshll.u32 %s2034_s17, 4  ;;  %s206_s24 = int_to_ptr.vmem [resolvable:$true] %s205_s24 }
  0x17   : > { %s189_s7 = sshll.u32 %s2545_s1, 4  ;;  %s2549_s3 = sld [smem:[#allocation20_spill]]  ;;  %s190_s7 = int_to_ptr.hbm [resolvable:$true] %s189_s7 }
  0x18   : > { %1669 = dma.hbm_to_vmem [thread:$0]  (!%p2141_p10), %s190_s7, 2048, %s192_s10, [#allocation9], %s2536_s15, %s2536_s15, %s2537_s16  }
  0x19   : > { %s203_s14 = sshll.u32 %s2548_s2, 4  ;;  %s2035_s9 = smov [#allocation11]   ;;  %s204_s14 = int_to_ptr.hbm [resolvable:$true] %s203_s14 }
  0x1a   : > { %1672 = dma.hbm_to_vmem [thread:$0]  (!%p2141_p10), %s204_s14, 4096, %s206_s24, [#allocation9], %s2536_s15, %s2536_s15, %s2537_s16  }
  0x1b   : > { %s219_s12 = sshll.u32 %s2035_s9, 4  ;;  %s35_s7 = sadd.s32 1, %s2025_s22  ;;  %s220_s12 = int_to_ptr.vmem [resolvable:$true] %s219_s12 }
  0x1c   : > { %p37_p12 = scmp.ge.s32.totalorder %s35_s7, 2  ;;  %s42_s10 = sadd.s32 1, %s2017_s20 }
  0x1d   : > { %s217_s6 = sshll.u32 %s2549_s3, 4  ;;  %p49_p13 = scmp.ne.s32.totalorder %s2017_s20, %s2013_s19  ;;  %s218_s6 = int_to_ptr.hbm [resolvable:$true] %s217_s6 }
  0x1e   : > { %1675 = dma.hbm_to_vmem [thread:$0]  (!%p2141_p10), %s218_s6, 2048, %s220_s12, [#allocation12], %s2536_s15, %s2536_s15, %s2537_s16  }
  0x1f   : > { %p50_p0 = scmp.eq.s32.totalorder %s2029_s23, 0  ;;  %s2560_s7 = smov (%p37_p12, %s35_s7), 0 }
  0x20   : > { %p2180_p5 = por %p2114_p2, %p49_p13  ;;  %s39_s14 = ssub.s32 %s2025_s22, %s2560_s7 }
  0x21   : > { %p2174_p3 = por %p50_p0, %p49_p13  ;;  %p1687_p7 = scmp.lt.s32.totalorder %s2029_s23, 2 }
  0x22   : > { %p40_p9 = scmp.eq.s32.totalorder %s39_s14, 0  ;;  %s236_s17 = sand.u32 1, %s2017_s20  }
  0x23   : > { %s1558_s24 = sshll.u32 %s236_s17, 4  ;;  %s1620_s30 = sshll.u32 %s2025_s22, 4 }
  0x24   : > { %s2189_s25 = scalar_select %p40_p9, %s2017_s20, %s42_s10  }
  0x25   : > { %s245_s12 = scalar_lea.hbm %s2530_s0, %s1620_s30  ;;  %s240_s15 = scalar_lea.vmem [#allocation5], %s1558_s24 }
  0x26   : > { %s248_s16 = sshll.u32 %s240_s15, 4  ;;  %s246_s27 = sshll.u32 %s245_s12, 4  ;;  %s249_s16 = int_to_ptr.vmem [resolvable:$true] %s248_s16  ;;  %s247_s27 = int_to_ptr.hbm [resolvable:$true] %s246_s27 }
  0x27   : > { %p1677_p2 = pnand %p1687_p7, %p2174_p3  ;;  %s237_s1 = scalar_lea.sflag [#allocation6], %s236_s17 }
  0x28   : > { %s2552_s2 = smov 8   ;;  %s2553_s3 = smov 128  }
  0x29   : > { %1679 = dma.hbm_to_vmem [thread:$0]  (!%p1677_p2), %s247_s27, 256, %s249_s16, %s237_s1, %s2553_s3, %s2553_s3, %s2552_s2  }
  0x2a   : > { %260 = sbr.rel (%p2133_p8) target bundleno = 1188 (0x4a4), region = 40  ;;  %s2203_s10 = sand.u32 (!%p2133_p8), 1, %s2013_s19  }
  0x2b   : > { %s1562_s15 = sshll.u32 (!%p2133_p8), %s2203_s10, 4  ;;  %s263_s14 = scalar_lea.sflag (!%p2133_p8), [#allocation6], %s2203_s10 }
  0x2c   : > { %s266_s13 = scalar_lea.vmem (!%p2133_p8), [#allocation5], %s1562_s15 }
  0x2f   : > { %1992 = dma.done.wait (%p2120_p4), %s263_s14, 256  }
  0x30   : > { %1994 = vsyncadd (%p2120_p4), %s263_s14, 4294967040 }
  0x31   : > { %1996 = dma.done.wait (%p2110_p1), [#allocation9], 6144  }
  0x32   : > { %1998 = vsyncadd (%p2110_p1), [#allocation9], 4294961152 }
  0x33   : > { %2000 = dma.done.wait (%p2110_p1), [#allocation12], 2048  }
  0x34   : > { %2002 = vsyncadd (%p2110_p1), [#allocation12], 4294965248  ;;  %v2221_v0 = vld [vmem:[%s266_s13 + $0x8] sm:$0xff]  ;;  %v2225_v1 = vld [vmem:[%s266_s13] sm:$0xff]  ;;  %vm461_vm0 = vcmask 130048   ;;  %s2036_s1 = smov 80  }
  0x35   : > { %1622 = vmatpush.xpose.msra.mxu1 %v2221_v0  ;;  %362 = vmatpush.xpose.msra.mxu0 %v2221_v0  ;;  %v513_v2 = vld [vmem:[#allocation8 + $0x78] sm:$0xff]  ;;  %v334_v3 = vld [vmem:[#allocation10 + $0x90] sm:$0xff]  ;;  %v511_v5 = vld [vmem:[#allocation8 + $0x68] sm:$0xff]  ;;  %s2037_s2 = smov 112   ;;  %s2038_s3 = smov 64  }
  0x36   : > { %1623 = vmatpush.xpose.msra.mxu2 %v2221_v0  ;;  %1624 = vmatpush.xpose.msra.mxu3 %v2221_v0  ;;  %v512_v4 = vld [vmem:[#allocation8 + $0x70] sm:$0xff]  ;;  %v510_v6 = vld [vmem:[#allocation8 + $0x60] sm:$0xff]  ;;  %v509_v7 = vld [vmem:[#allocation8 + $0x58] sm:$0xff]  ;;  %s2039_s26 = smov 96   ;;  %s2040_s28 = smov 16  }
  0x37   : > { %v335_v8 = vld [vmem:[#allocation10 + $0x98] sm:$0xff]  ;;  %v508_v9 = vld [vmem:[#allocation8 + $0x50] sm:$0xff]  ;;  %v507_v10 = vld [vmem:[#allocation8 + $0x48] sm:$0xff]  ;;  %s2041_s8 = smov 48   ;;  %s2042_s16 = smov 32  }
  0x38   : > { %v316_v11 = vld [vmem:[#allocation10] sm:$0xff]  ;;  %v505_v13 = vld [vmem:[#allocation8 + $0x38] sm:$0xff]  ;;  %v504_v15 = vld [vmem:[#allocation8 + $0x30] sm:$0xff]  ;;  %s1621_s30 = sshll.u32 %s2021_s21, 4  ;;  %s308_s27 = scalar_lea.vmem [#allocation13], %s1562_s15 }
  0x39   : > { %1625 = vmatpush.xpose.msra.mxu1 %v2225_v1  ;;  %363 = vmatpush.xpose.msra.mxu0 %v2225_v1  ;;  %v506_v12 = vld [vmem:[#allocation8 + $0x40] sm:$0xff]  ;;  %v503_v16 = vld [vmem:[#allocation8 + $0x28] sm:$0xff]  ;;  %v501_v19 = vld [vmem:[#allocation8 + $0x18] sm:$0xff]  ;;  %s1432_s12 = scalar_lea.hbm %s2535_s5, %s1621_s30  ;;  %s1433_s14 = sshll.u32 %s308_s27, 4  ;;  %s1434_s14 = int_to_ptr.vmem [resolvable:$true] %s1433_s14 }
  0x3a   : > { %1626 = vmatpush.xpose.msra.mxu2 %v2225_v1  ;;  %1627 = vmatpush.xpose.msra.mxu3 %v2225_v1  ;;  %v336_v14 = vld [vmem:[#allocation10 + $0xa0] sm:$0xff]  ;;  %v317_v17 = vld [vmem:[#allocation10 + $0x8] sm:$0xff]  ;;  %v500_v21 = vld [vmem:[#allocation8 + $0x10] sm:$0xff]  ;;  %s1435_s13 = sshll.u32 %s1432_s12, 4  ;;  %s1959_s15 = scalar_lea.hbm %s2535_s5, 32  ;;  %s1436_s13 = int_to_ptr.hbm [resolvable:$true] %s1435_s13 }
  0x3b   : > { %v502_v18 = vld [vmem:[#allocation8 + $0x20] sm:$0xff]  ;;  %v337_v20 = vld [vmem:[#allocation10 + $0xa8] sm:$0xff]  ;;  %v338_v24 = vld [vmem:[#allocation10 + $0xb0] sm:$0xff] }
  0x3c   : > { %418 = vmatmul.f32.vlgmr.msra.gmra.mxu1 %v334_v3  ;;  %364 = vmatmul.f32.vlgmr.msra.gmra.mxu0 %v316_v11  ;;  %v499_v22 = vld [vmem:[#allocation8 + $0x8] sm:$0xff]  ;;  %v498_v23 = vld [vmem:[#allocation8] sm:$0xff]  ;;  %v318_v25 = vld [vmem:[#allocation10 + $0x10] sm:$0xff] }
  0x3d   : > { %514 = vmatpush.msrb.mxu1 %v513_v2  ;;  %v339_v26 = vld [vmem:[#allocation10 + $0xb8] sm:$0xff]  ;;  %v340_v28 = vld [vmem:[#allocation10 + $0xc0] sm:$0xff]  ;;  %v321_v30 = vld [vmem:[#allocation10 + $0x28] sm:$0xff] }
  0x3e   : > { %v319_v27 = vld [vmem:[#allocation10 + $0x18] sm:$0xff]  ;;  %v320_v29 = vld [vmem:[#allocation10 + $0x20] sm:$0xff]  ;;  %v322_v31 = vld [vmem:[#allocation10 + $0x30] sm:$0xff] }
  0x3f   : > { %515 = vmatpush.msrb.mxu1 %v512_v4  ;;  %v323_v32 = vld [vmem:[#allocation10 + $0x38] sm:$0xff]  ;;  %v324_v33 = vld [vmem:[#allocation10 + $0x40] sm:$0xff]  ;;  %v325_v34 = vld [vmem:[#allocation10 + $0x48] sm:$0xff] }
  0x40   : > { %v326_v35 = vld [vmem:[#allocation10 + $0x50] sm:$0xff]  ;;  %v327_v37 = vld [vmem:[#allocation10 + $0x58] sm:$0xff]  ;;  %v328_v39 = vld [vmem:[#allocation10 + $0x60] sm:$0xff] }
  0x41   : > { %516 = vmatpush.msrb.mxu1 %v511_v5  ;;  %v329_v42 = vld [vmem:[#allocation10 + $0x68] sm:$0xff]  ;;  %v330_v46 = vld [vmem:[#allocation10 + $0x70] sm:$0xff]  ;;  %v331_v50 = vld [vmem:[#allocation10 + $0x78] sm:$0xff] }
  0x42   : > { %v341_v45 = vld [vmem:[#allocation10 + $0xc8] sm:$0xff]  ;;  %v342_v61 = vld [vmem:[#allocation10 + $0xd0] sm:$0xff] }
  0x43   : > { %517 = vmatpush.msrb.mxu1 %v510_v6  ;;  %439 = vmatmul.f32.vlgmr.msra.gmra.mxu2 %v341_v45  ;;  %v345_v11 = vld [vmem:[#allocation10 + $0xe8] sm:$0xff] }
  0x44   : > { %421 = vmatmul.f32.gmra.mxu1 %v335_v8  ;;  %367 = vmatmul.f32.gmra.mxu0 %v317_v17 }
  0x45   : > { %518 = vmatpush.msrb.mxu1 %v509_v7  ;;  %442 = vmatmul.f32.vlgmr.msra.gmra.mxu3 %v342_v61 }
  0x47   : > { %519 = vmatpush.msrb.mxu1 %v508_v9  ;;  %v344_v9 = vld [vmem:[#allocation10 + $0xe0] sm:$0xff] }
  0x49   : > { %520 = vmatpush.msrb.mxu1 %v507_v10 }
  0x4b   : > { %521 = vmatpush.msrb.mxu1 %v506_v12 }
  0x4c   : > { %424 = vmatmul.f32.gmra.mxu1 %v336_v14  ;;  %370 = vmatmul.f32.gmra.mxu0 %v318_v25 }
  0x4d   : > { %522 = vmatpush.msrb.mxu1 %v505_v13  ;;  %v346_v13 = vld [vmem:[#allocation10 + $0xf0] sm:$0xff] }
  0x4f   : > { %523 = vmatpush.msrb.mxu1 %v504_v15  ;;  %v347_v15 = vld [vmem:[#allocation10 + $0xf8] sm:$0xff] }
  0x51   : > { %524 = vmatpush.msrb.mxu1 %v503_v16 }
  0x53   : > { %525 = vmatpush.msrb.mxu1 %v502_v18 }
  0x54   : > { %427 = vmatmul.f32.gmra.mxu1 %v337_v20  ;;  %373 = vmatmul.f32.gmra.mxu0 %v319_v27 }
  0x55   : > { %526 = vmatpush.msrb.mxu1 %v501_v19 }
  0x57   : > { %527 = vmatpush.msrb.mxu1 %v500_v21 }
  0x59   : > { %528 = vmatpush.msrb.mxu1 %v499_v22 }
  0x5b   : > { %529 = vmatpush.msrb.mxu1 %v498_v23 }
  0x5c   : > { %430 = vmatmul.f32.gmra.mxu1 %v338_v24  ;;  %376 = vmatmul.f32.gmra.mxu0 %v320_v29 }
  0x64   : > { %433 = vmatmul.f32.gmra.mxu1 %v339_v26  ;;  %379 = vmatmul.f32.gmra.mxu0 %v321_v30 }
  0x6c   : > { %436 = vmatmul.f32.gmra.mxu1 %v340_v28  ;;  %382 = vmatmul.f32.gmra.mxu0 %v322_v31 }
  0x74   : > { %530 = vmatmul.f32.vlgmr.msrb.gmra.mxu1 %v2225_v1  ;;  %385 = vmatmul.f32.gmra.mxu0 %v323_v32 }
  0x7c   : > { %533 = vmatmul.f32.gmra.mxu1 %v2221_v0  ;;  %388 = vmatmul.f32.gmra.mxu0 %v324_v33  ;;  %v343_v0 = vld [vmem:[#allocation10 + $0xd8] sm:$0xff] }
  0x7d   : > { %445 = vmatmul.f32.gmra.mxu3 %v343_v0 }
  0x84   : > { %391 = vmatmul.f32.gmra.mxu0 %v325_v34 }
  0x85   : > { %448 = vmatmul.f32.gmra.mxu3 %v344_v9 }
  0x8c   : > { %394 = vmatmul.f32.gmra.mxu0 %v326_v35 }
  0x8d   : > { %451 = vmatmul.f32.gmra.mxu3 %v345_v11 }
  0x94   : > { %397 = vmatmul.f32.gmra.mxu0 %v327_v37 }
  0x95   : > { %454 = vmatmul.f32.gmra.mxu3 %v346_v13 }
  0x9c   : > { %400 = vmatmul.f32.gmra.mxu0 %v328_v39 }
  0x9d   : > { %457 = vmatmul.f32.gmra.mxu3 %v347_v15 }
  0xa4   : > { %403 = vmatmul.f32.gmra.mxu0 %v329_v42 }
  0xac   : > { %406 = vmatmul.f32.gmra.mxu0 %v330_v46 }
  0xb4   : > { %409 = vmatmul.f32.gmra.mxu0 %v331_v50 }
  0xb9   : > { %v419_v36 = vpop.f32.mrf.mxu1  ;;  %v365_v40 = vpop.f32.mrf.mxu0 }
  0xba   : > { %480 = vst.msk [vmem:[#allocation4 + $0x10] sm:$0xff] %vm461_vm0, %v419_v36 }
  0xbb   : > { %462 = vst.msk [vmem:[#allocation3] sm:$0xff] %vm461_vm0, %v365_v40 }
  0xc1   : > { %v422_v38 = vpop.f32.mrf.mxu1  ;;  %v368_v43 = vpop.f32.mrf.mxu0 }
  0xc2   : > { %481 = vst.msk [vmem:[#allocation4 + $0x18] sm:$0xff] %vm461_vm0, %v422_v38  ;;  %v621_v48 = vld [vmem:[#allocation3] sm:$0xff] }
  0xc3   : > { %463 = vst.msk [vmem:[#allocation3 + $0x8] sm:$0xff] %vm461_vm0, %v368_v43 }
  0xc6   : > { %v440_v22 = vpop.f32.mrf.mxu2 }
  0xc7   : > { %487 = vst.msk [vmem:[#allocation4 + $0x48] sm:$0xff] %vm461_vm0, %v440_v22 }
  0xc9   : > { %v425_v41 = vpop.f32.mrf.mxu1  ;;  %v371_v53 = vpop.f32.mrf.mxu0 }
  0xca   : > { %482 = vst.msk [vmem:[#allocation4 + $0x20] sm:$0xff] %vm461_vm0, %v425_v41  ;;  %v622_v47 = vld [vmem:[#allocation3 + $0x8] sm:$0xff] }
  0xcb   : > { %673 = vmatpush.msra.mxu2 %v622_v47  ;;  %464 = vst.msk [vmem:[#allocation3 + $0x10] sm:$0xff] %vm461_vm0, %v371_v53 }
  0xcd   : > { %674 = vmatpush.msra.mxu2 %v621_v48 }
  0xd1   : > { %v428_v44 = vpop.f32.mrf.mxu1  ;;  %v374_v55 = vpop.f32.mrf.mxu0 }
  0xd2   : > { %483 = vst.msk [vmem:[#allocation4 + $0x28] sm:$0xff] %vm461_vm0, %v428_v44  ;;  %v623_v60 = vld [vmem:[#allocation3 + $0x10] sm:$0xff]  ;;  %v443_v44 = vpop.f32.mrf.mxu3 }
  0xd3   : > { %465 = vst.msk [vmem:[#allocation3 + $0x18] sm:$0xff] %vm461_vm0, %v374_v55 }
  0xd4   : > { %488 = vst.msk [vmem:[#allocation4 + $0x50] sm:$0xff] %vm461_vm0, %v443_v44 }
  0xd9   : > { %v431_v49 = vpop.f32.mrf.mxu1  ;;  %v377_v58 = vpop.f32.mrf.mxu0 }
  0xda   : > { %484 = vst.msk [vmem:[#allocation4 + $0x30] sm:$0xff] %vm461_vm0, %v431_v49  ;;  %v624_v59 = vld [vmem:[#allocation3 + $0x18] sm:$0xff] }
  0xdb   : > { %466 = vst.msk [vmem:[#allocation3 + $0x20] sm:$0xff] %vm461_vm0, %v377_v58  ;;  %702 = vmatpush.msrb.mxu3 %v624_v59 }
  0xdd   : > { %703 = vmatpush.msrb.mxu3 %v623_v60 }
  0xe1   : > { %v434_v51 = vpop.f32.mrf.mxu1  ;;  %v380_v63 = vpop.f32.mrf.mxu0 }
  0xe2   : > { %485 = vst.msk [vmem:[#allocation4 + $0x38] sm:$0xff] %vm461_vm0, %v434_v51  ;;  %v625_v3 = vld [vmem:[#allocation3 + $0x20] sm:$0xff] }
  0xe3   : > { %467 = vst.msk [vmem:[#allocation3 + $0x28] sm:$0xff] %vm461_vm0, %v380_v63 }
  0xe9   : > { %v437_v52 = vpop.f32.mrf.mxu1  ;;  %v383_v1 = vpop.f32.mrf.mxu0 }
  0xea   : > { %486 = vst.msk [vmem:[#allocation4 + $0x40] sm:$0xff] %vm461_vm0, %v437_v52  ;;  %v626_v2 = vld [vmem:[#allocation3 + $0x28] sm:$0xff] }
  0xeb   : > { %468 = vst.msk [vmem:[#allocation3 + $0x30] sm:$0xff] %vm461_vm0, %v383_v1 }
  0xf1   : > { %v531_v54 = vpop.f32.mrf.mxu1  ;;  %v386_v4 = vpop.f32.mrf.mxu0 }
  0xf2   : > { %538 = vst.msk [vmem:[#allocation2] sm:$0xff] %vm461_vm0, %v531_v54  ;;  %560 = vrot.lane.b32.xlu2 %v531_v54, %s2036_s1  ;;  %542 = vrot.lane.b32.xlu0 %v531_v54, %s2037_s2  ;;  %v627_v7 = vld [vmem:[#allocation3 + $0x30] sm:$0xff] }
  0xf3   : > { %469 = vst.msk [vmem:[#allocation3 + $0x38] sm:$0xff] %vm461_vm0, %v386_v4 }
  0xf9   : > { %v534_v56 = vpop.f32.mrf.mxu1  ;;  %v605_v57 = vld [vmem:[#allocation2] sm:$0xff]  ;;  %v389_v5 = vpop.f32.mrf.mxu0 }
  0xfa   : > { %539 = vst.msk [vmem:[#allocation2 + $0x8] sm:$0xff] %vm461_vm0, %v534_v56  ;;  %569 = vrot.lane.b32.xlu2 %v531_v54, %s2038_s3  ;;  %551 = vrot.lane.b32.xlu0 %v531_v54, %s2039_s26  ;;  %v628_v6 = vld [vmem:[#allocation3 + $0x38] sm:$0xff] }
  0xfb   : > { %544 = vrot.lane.b32.xlu1 %v534_v56, %s2037_s2  ;;  %1567 = vmatmul.msk.f32.vlgmr.msra.gmra.mxu2 %vm461_vm0, %v605_v57  ;;  %470 = vst.msk [vmem:[#allocation3 + $0x40] sm:$0xff] %vm461_vm0, %v389_v5  ;;  %s1953_s2 = sshra.s32 %s1436_s13, 4  ;;  %s1954_s2 = int_to_ptr.hbm [resolvable:$true] %s1953_s2 }
  0xfc   : > { %731 = vmatpush.msra.mxu2 %v626_v2  ;;  %760 = vmatpush.msra.mxu3 %v628_v6  ;;  %s1955_s21 = scalar_lea.hbm %s1954_s2, 16  ;;  %p1960_p10 = scmp.lt.s32.totalorder %s1954_s2, %s2535_s5 }
  0xfd   : > { %p1956_p1 = scmp.ne.s32.totalorder %s1954_s2, %s1955_s21  ;;  %p1961_p12 = scmp.lt.s32.totalorder %s1959_s15, %s1955_s21 }
  0xfe   : > { %732 = vmatpush.msra.mxu2 %v625_v3  ;;  %761 = vmatpush.msra.mxu3 %v627_v7 }
  0xff   : > { %p1957_p4 = pnand %p1956_p1, %p2180_p5  ;;  %p1962_p13 = por %p1961_p12, %p1960_p10 }
 0x100   : > { %v446_v53 = vpop.f32.mrf.mxu3 }
 0x101   : > { %v606_v62 = vld [vmem:[#allocation2 + $0x8] sm:$0xff]  ;;  %v392_v8 = vpop.f32.mrf.mxu0  ;;  %489 = vst.msk [vmem:[#allocation4 + $0x58] sm:$0xff] %vm461_vm0, %v446_v53  ;;  %p1958_p8 = pneg %p1957_p4 }
 0x102   : > { %596 = vrot.lane.b32.xlu2 %v531_v54, %s2040_s28  ;;  %562 = vrot.lane.b32.xlu0 %v534_v56, %s2036_s1  ;;  %471 = vst.msk [vmem:[#allocation3 + $0x48] sm:$0xff] %vm461_vm0, %v392_v8  ;;  %v629_v37 = vld [vmem:[#allocation3 + $0x40] sm:$0xff]  ;;  %s1419_s1 = scalar_lea.sflag [#allocation7], %s2203_s10 }
 0x103   : > { %553 = vrot.lane.b32.xlu1 %v534_v56, %s2039_s26  ;;  %1568 = vmatmul.msk.f32.gmra.mxu2 %vm461_vm0, %v606_v62  ;;  %p1963_p0 = pnand %p1962_p13, %p1958_p8 }
 0x108   : > { %v449_v62 = vpop.f32.mrf.mxu3 }
 0x109   : > { %v395_v10 = vpop.f32.mrf.mxu0  ;;  %v630_v36 = vld [vmem:[#allocation3 + $0x48] sm:$0xff]  ;;  %490 = vst.msk [vmem:[#allocation4 + $0x60] sm:$0xff] %vm461_vm0, %v449_v62 }
 0x10a   : > { %598 = vrot.lane.b32.xlu2 %v534_v56, %s2040_s28  ;;  %578 = vrot.lane.b32.xlu0 %v531_v54, %s2041_s8  ;;  %472 = vst.msk [vmem:[#allocation3 + $0x50] sm:$0xff] %vm461_vm0, %v395_v10 }
 0x10b   : > { %571 = vrot.lane.b32.xlu1 %v534_v56, %s2038_s3 }
 0x110   : > { %v452_v63 = vpop.f32.mrf.mxu3 }
 0x111   : > { %v398_v12 = vpop.f32.mrf.mxu0  ;;  %v631_v31 = vld [vmem:[#allocation3 + $0x50] sm:$0xff]  ;;  %491 = vst.msk [vmem:[#allocation4 + $0x68] sm:$0xff] %vm461_vm0, %v452_v63 }
 0x112   : > { %580 = vrot.lane.b32.xlu0 %v534_v56, %s2041_s8  ;;  %473 = vst.msk [vmem:[#allocation3 + $0x58] sm:$0xff] %vm461_vm0, %v398_v12 }
 0x113   : > { %587 = vrot.lane.b32.xlu1 %v531_v54, %s2042_s16 }
 0x118   : > { %v455_v0 = vpop.f32.mrf.mxu3 }
 0x119   : > { %v401_v14 = vpop.f32.mrf.mxu0  ;;  %v632_v27 = vld [vmem:[#allocation3 + $0x58] sm:$0xff]  ;;  %492 = vst.msk [vmem:[#allocation4 + $0x70] sm:$0xff] %vm461_vm0, %v455_v0 }
 0x11a   : > { %474 = vst.msk [vmem:[#allocation3 + $0x60] sm:$0xff] %vm461_vm0, %v401_v14 }
 0x11b   : > { %589 = vrot.lane.b32.xlu1 %v534_v56, %s2042_s16 }
 0x120   : > { %v458_v1 = vpop.f32.mrf.mxu3 }
 0x121   : > { %v404_v16 = vpop.f32.mrf.mxu0  ;;  %v633_v19 = vld [vmem:[#allocation3 + $0x60] sm:$0xff]  ;;  %493 = vst.msk [vmem:[#allocation4 + $0x78] sm:$0xff] %vm461_vm0, %v458_v1 }
 0x122   : > { %475 = vst.msk [vmem:[#allocation3 + $0x68] sm:$0xff] %vm461_vm0, %v404_v16 }
 0x129   : > { %v634_v18 = vld [vmem:[#allocation3 + $0x68] sm:$0xff]  ;;  %v407_v21 = vpop.f32.mrf.mxu0 }
 0x12a   : > { %847 = vmatpush.msra.mxu1 %v634_v18  ;;  %476 = vst.msk [vmem:[#allocation3 + $0x70] sm:$0xff] %vm461_vm0, %v407_v21 }
 0x12c   : > { %848 = vmatpush.msra.mxu1 %v633_v19 }
 0x131   : > { %v410_v24 = vpop.f32.mrf.mxu0  ;;  %v635_v51 = vld [vmem:[#allocation3 + $0x70] sm:$0xff] }
 0x132   : > { %477 = vst.msk [vmem:[#allocation3 + $0x78] sm:$0xff] %vm461_vm0, %v410_v24 }
 0x139   : > { %v636_v46 = vld [vmem:[#allocation3 + $0x78] sm:$0xff] }
 0x14c   : > { %v561_v17 = vpop.permute.xlu2 %560 }
 0x14d   : > { %567 = vst.msk [vmem:[#allocation2 + $0x30] sm:$0xff] %vm461_vm0, %v561_v17 }
 0x154   : > { %v570_v20 = vpop.permute.xlu2 %569  ;;  %v611_v41 = vld [vmem:[#allocation2 + $0x30] sm:$0xff] }
 0x155   : > { %576 = vst.msk [vmem:[#allocation2 + $0x40] sm:$0xff] %vm461_vm0, %v570_v20 }
 0x15c   : > { %v597_v23 = vpop.permute.xlu2 %596  ;;  %v613_v49 = vld [vmem:[#allocation2 + $0x40] sm:$0xff] }
 0x15d   : > { %603 = vst.msk [vmem:[#allocation2 + $0x70] sm:$0xff] %vm461_vm0, %v597_v23 }
 0x164   : > { %v543_v25 = vpop.permute.xlu0 %542  ;;  %v599_v26 = vpop.permute.xlu2 %598  ;;  %v619_v60 = vld [vmem:[#allocation2 + $0x70] sm:$0xff] }
 0x165   : > { %549 = vst.msk [vmem:[#allocation2 + $0x10] sm:$0xff] %vm461_vm0, %v543_v25 }
 0x166   : > { %604 = vst.msk [vmem:[#allocation2 + $0x78] sm:$0xff] %vm461_vm0, %v599_v26 }
 0x16c   : > { %v552_v28 = vpop.permute.xlu0 %551  ;;  %v607_v29 = vld [vmem:[#allocation2 + $0x10] sm:$0xff] }
 0x16d   : > { %558 = vst.msk [vmem:[#allocation2 + $0x20] sm:$0xff] %vm461_vm0, %v552_v28  ;;  %v545_v30 = vpop.permute.xlu1 %544  ;;  %1569 = vmatmul.msk.f32.vlgmr.msrb.gmra.mxu3 %vm461_vm0, %v607_v29  ;;  %v620_v61 = vld [vmem:[#allocation2 + $0x78] sm:$0xff] }
 0x16e   : > { %550 = vst.msk [vmem:[#allocation2 + $0x18] sm:$0xff] %vm461_vm0, %v545_v30  ;;  %818 = vmatpush.msrb.mxu3 %v632_v27 }
 0x170   : > { %819 = vmatpush.msrb.mxu3 %v631_v31 }
 0x174   : > { %v563_v32 = vpop.permute.xlu0 %562  ;;  %v609_v33 = vld [vmem:[#allocation2 + $0x20] sm:$0xff] }
 0x175   : > { %568 = vst.msk [vmem:[#allocation2 + $0x38] sm:$0xff] %vm461_vm0, %v563_v32  ;;  %v554_v34 = vpop.permute.xlu1 %553  ;;  %v608_v35 = vld [vmem:[#allocation2 + $0x18] sm:$0xff]  ;;  %1571 = vmatmul.msk.f32.vlgmr.msra.gmra.mxu2 %vm461_vm0, %v609_v33 }
 0x176   : > { %559 = vst.msk [vmem:[#allocation2 + $0x28] sm:$0xff] %vm461_vm0, %v554_v34  ;;  %1570 = vmatmul.msk.f32.gmra.mxu3 %vm461_vm0, %v608_v35  ;;  %789 = vmatpush.msra.mxu2 %v630_v36 }
 0x178   : > { %790 = vmatpush.msra.mxu2 %v629_v37 }
 0x17c   : > { %v579_v38 = vpop.permute.xlu0 %578  ;;  %v612_v48 = vld [vmem:[#allocation2 + $0x38] sm:$0xff] }
 0x17d   : > { %585 = vst.msk [vmem:[#allocation2 + $0x50] sm:$0xff] %vm461_vm0, %v579_v38  ;;  %v572_v39 = vpop.permute.xlu1 %571  ;;  %v610_v40 = vld [vmem:[#allocation2 + $0x28] sm:$0xff] }
 0x17e   : > { %577 = vst.msk [vmem:[#allocation2 + $0x48] sm:$0xff] %vm461_vm0, %v572_v39  ;;  %v2277_v42 = vpop.f32.mrf.mxu2  ;;  %1572 = vmatmul.msk.f32.gmra.mxu2 %vm461_vm0, %v610_v40  ;;  %1573 = vmatmul.msk.f32.vlgmr.msra.gmra.mxu3 %vm461_vm0, %v611_v41  ;;  %v332_v40 = vld [vmem:[#allocation10 + $0x80] sm:$0xff]  ;;  %v333_v41 = vld [vmem:[#allocation10 + $0x88] sm:$0xff] }
 0x17f   : > { %v885_v43 = vsel %vm461_vm0, %v2277_v42, -inf  ;;  %412 = vmatmul.f32.gmra.mxu0 %v332_v40 }
 0x180   : > { %886 = vmax.xlane.f32.xlu1 %v885_v43 }
 0x184   : > { %v581_v45 = vpop.permute.xlu0 %580  ;;  %v615_v56 = vld [vmem:[#allocation2 + $0x50] sm:$0xff] }
 0x185   : > { %586 = vst.msk [vmem:[#allocation2 + $0x58] sm:$0xff] %vm461_vm0, %v581_v45  ;;  %v588_v47 = vpop.permute.xlu1 %587  ;;  %v614_v55 = vld [vmem:[#allocation2 + $0x48] sm:$0xff] }
 0x186   : > { %594 = vst.msk [vmem:[#allocation2 + $0x60] sm:$0xff] %vm461_vm0, %v588_v47  ;;  %v2286_v50 = vpop.f32.mrf.mxu2  ;;  %1574 = vmatmul.msk.f32.gmra.mxu3 %vm461_vm0, %v612_v48  ;;  %1575 = vmatmul.msk.f32.vlgmr.msra.gmra.mxu2 %vm461_vm0, %v613_v49 }
 0x187   : > { %876 = vmatpush.msra.mxu2 %v636_v46  ;;  %v888_v52 = vsel %vm461_vm0, %v2286_v50, -inf  ;;  %415 = vmatmul.f32.gmra.mxu0 %v333_v41 }
 0x188   : > { %889 = vmax.xlane.f32.xlu2 %v888_v52 }
 0x189   : > { %877 = vmatpush.msra.mxu2 %v635_v51 }
 0x18c   : > { %v616_v58 = vld [vmem:[#allocation2 + $0x58] sm:$0xff] }
 0x18d   : > { %v590_v54 = vpop.permute.xlu1 %589  ;;  %v617_v57 = vld [vmem:[#allocation2 + $0x60] sm:$0xff] }
 0x18e   : > { %595 = vst.msk [vmem:[#allocation2 + $0x68] sm:$0xff] %vm461_vm0, %v590_v54  ;;  %1576 = vmatmul.msk.f32.gmra.mxu2 %vm461_vm0, %v614_v55  ;;  %1577 = vmatmul.msk.f32.vlgmr.msrb.gmra.mxu3 %vm461_vm0, %v615_v56 }
 0x18f   : > { %1579 = vmatmul.msk.f32.vlgmr.msra.gmra.mxu1 %vm461_vm0, %v617_v57 }
 0x195   : > { %v618_v59 = vld [vmem:[#allocation2 + $0x68] sm:$0xff] }
 0x196   : > { %1578 = vmatmul.msk.f32.gmra.mxu3 %vm461_vm0, %v616_v58  ;;  %1581 = vmatmul.msk.f32.vlgmr.msra.gmra.mxu2 %vm461_vm0, %v619_v60 }
 0x197   : > { %1580 = vmatmul.msk.f32.gmra.mxu1 %vm461_vm0, %v618_v59 }
 0x19e   : > { %1582 = vmatmul.msk.f32.gmra.mxu2 %vm461_vm0, %v620_v61 }
 0x1f0   : > { %v705_v2 = vpop.f32.mrf.mxu3 }
 0x1f1   : > { %v891_v3 = vsel %vm461_vm0, %v705_v2, -inf }
 0x1f2   : > { %892 = vmax.xlane.f32.xlu2 %v891_v3 }
 0x1f3   : > { %v887_v19 = vpop.xlane.xlu1 %886 }
 0x1f4   : > { %v933_v22 = vsub.f32 %v2277_v42, %v887_v19 }
 0x1f6   : > { %v949_v29 = vmul.f32 1.442695, %v933_v22 }
 0x1f8   : > { %v2306_v4 = vpop.f32.mrf.mxu2  ;;  %1755 = vpow2.f32 %v949_v29 }
 0x1f9   : > { %v2308_v5 = vpop.f32.mrf.mxu3  ;;  %v897_v12 = vsel %vm461_vm0, %v2306_v4, -inf }
 0x1fa   : > { %v894_v6 = vsel %vm461_vm0, %v2308_v5, -inf }
 0x1fb   : > { %895 = vmax.xlane.f32.xlu0 %v894_v6  ;;  %v890_v20 = vpop.xlane.xlu2 %889 }
 0x1fc   : > { %v934_v25 = vsub.f32 %v2286_v50, %v890_v20 }
 0x1fe   : > { %v951_v30 = vmul.f32 1.442695, %v934_v25  ;;  %v2358_v35 = vpop.eup %1755 }
 0x1ff   : > { %v981_v37 = vsel %vm461_vm0, %v2358_v35, 0.0 }
 0x200   : > { %1757 = vpow2.f32 %v951_v30 }
 0x201   : > { %v2312_v7 = vpop.f32.mrf.mxu2  ;;  %v2314_v8 = vpop.f32.mrf.mxu3 }
 0x202   : > { %v900_v9 = vsel %vm461_vm0, %v2312_v7, -inf  ;;  %v903_v17 = vsel %vm461_vm0, %v2314_v8, -inf }
 0x203   : > { %901 = vmax.xlane.f32.xlu1 %v900_v9 }
 0x206   : > { %v2360_v36 = vpop.eup %1757 }
 0x207   : > { %v984_v39 = vsel %vm461_vm0, %v2360_v36, 0.0 }
 0x209   : > { %v2318_v10 = vpop.f32.mrf.mxu3  ;;  %v2320_v11 = vpop.f32.mrf.mxu2 }
 0x20a   : > { %v906_v13 = vsel %vm461_vm0, %v2318_v10, -inf  ;;  %v909_v26 = vsel %vm461_vm0, %v2320_v11, -inf }
 0x20b   : > { %898 = vmax.xlane.f32.xlu1 %v897_v12  ;;  %907 = vmax.xlane.f32.xlu2 %v906_v13 }
 0x20c   : > { %v2326_v14 = vpop.f32.mrf.mxu1 }
 0x20d   : > { %v921_v34 = vsel %vm461_vm0, %v2326_v14, -inf }
 0x211   : > { %v2328_v15 = vpop.f32.mrf.mxu2  ;;  %v2330_v16 = vpop.f32.mrf.mxu3 }
 0x212   : > { %v912_v18 = vsel %vm461_vm0, %v2328_v15, -inf  ;;  %v915_v32 = vsel %vm461_vm0, %v2330_v16, -inf }
 0x213   : > { %904 = vmax.xlane.f32.xlu2 %v903_v17  ;;  %913 = vmax.xlane.f32.xlu0 %v912_v18 }
 0x214   : > { %v2336_v21 = vpop.f32.mrf.mxu1 }
 0x215   : > { %v924_v28 = vsel %vm461_vm0, %v2336_v21, -inf }
 0x219   : > { %v2339_v23 = vpop.f32.mrf.mxu3  ;;  %v2341_v24 = vpop.f32.mrf.mxu2 }
 0x21a   : > { %v918_v27 = vsel %vm461_vm0, %v2339_v23, -inf  ;;  %v927_v38 = vsel %vm461_vm0, %v2341_v24, -inf }
 0x21b   : > { %910 = vmax.xlane.f32.xlu0 %v909_v26  ;;  %919 = vmax.xlane.f32.xlu1 %v918_v27 }
 0x21c   : > { %925 = vmax.xlane.f32.xlu2 %v924_v28 }
 0x221   : > { %v2350_v31 = vpop.f32.mrf.mxu2 }
 0x222   : > { %v930_v33 = vsel %vm461_vm0, %v2350_v31, -inf }
 0x223   : > { %916 = vmax.xlane.f32.xlu1 %v915_v32  ;;  %931 = vmax.xlane.f32.xlu0 %v930_v33 }
 0x224   : > { %922 = vmax.xlane.f32.xlu2 %v921_v34 }
 0x22b   : > { %982 = vadd.xlane.f32.xlu1 %v981_v37  ;;  %928 = vmax.xlane.f32.xlu0 %v927_v38 }
 0x22c   : > { %985 = vadd.xlane.f32.xlu2 %v984_v39 }
 0x265   : > { %v893_v42 = vpop.xlane.xlu2 %892 }
 0x266   : > { %v935_v43 = vsub.f32 %v705_v2, %v893_v42 }
 0x268   : > { %v953_v44 = vmul.f32 1.442695, %v935_v43 }
 0x26a   : > { %1759 = vpow2.f32 %v953_v44 }
 0x26e   : > { %v896_v45 = vpop.xlane.xlu0 %895 }
 0x26f   : > { %v936_v46 = vsub.f32 %v2308_v5, %v896_v45 }
 0x270   : > { %v2369_v47 = vpop.eup %1759 }
 0x271   : > { %v955_v48 = vmul.f32 1.442695, %v936_v46  ;;  %v987_v49 = vsel %vm461_vm0, %v2369_v47, 0.0 }
 0x272   : > { %988 = vadd.xlane.f32.xlu2 %v987_v49 }
 0x273   : > { %1761 = vpow2.f32 %v955_v48 }
 0x276   : > { %v902_v50 = vpop.xlane.xlu1 %901 }
 0x277   : > { %v938_v51 = vsub.f32 %v2312_v7, %v902_v50 }
 0x279   : > { %v2374_v52 = vpop.eup %1761  ;;  %v959_v53 = vmul.f32 1.442695, %v938_v51 }
 0x27a   : > { %v990_v54 = vsel %vm461_vm0, %v2374_v52, 0.0 }
 0x27b   : > { %1763 = vpow2.f32 %v959_v53  ;;  %991 = vadd.xlane.f32.xlu0 %v990_v54 }
 0x27e   : > { %v899_v55 = vpop.xlane.xlu1 %898  ;;  %v908_v56 = vpop.xlane.xlu2 %907 }
 0x27f   : > { %v937_v57 = vsub.f32 %v2306_v4, %v899_v55  ;;  %v940_v58 = vsub.f32 %v2318_v10, %v908_v56 }
 0x281   : > { %v2380_v59 = vpop.eup %1763  ;;  %v957_v60 = vmul.f32 1.442695, %v937_v57  ;;  %v963_v61 = vmul.f32 1.442695, %v940_v58  ;;  %v413_v58 = vpop.f32.mrf.mxu0 }
 0x282   : > { %v996_v62 = vsel %vm461_vm0, %v2380_v59, 0.0  ;;  %478 = vst.msk [vmem:[#allocation4] sm:$0xff] %vm461_vm0, %v413_v58 }
 0x283   : > { %1765 = vpow2.f32 %v957_v60  ;;  %997 = vadd.xlane.f32.xlu2 %v996_v62 }
 0x284   : > { %1767 = vpow2.f32 %v963_v61 }
 0x286   : > { %v905_v63 = vpop.xlane.xlu2 %904  ;;  %v914_v0 = vpop.xlane.xlu0 %913 }
 0x287   : > { %v939_v1 = vsub.f32 %v2314_v8, %v905_v63  ;;  %v942_v2 = vsub.f32 %v2328_v15, %v914_v0 }
 0x289   : > { %v2386_v3 = vpop.eup %1765  ;;  %v961_v4 = vmul.f32 1.442695, %v939_v1  ;;  %v967_v5 = vmul.f32 1.442695, %v942_v2  ;;  %v416_v60 = vpop.f32.mrf.mxu0  ;;  %v637_v61 = vld [vmem:[#allocation4] sm:$0xff] }
 0x28a   : > { %v2388_v6 = vpop.eup %1767  ;;  %v993_v7 = vsel %vm461_vm0, %v2386_v3, 0.0  ;;  %479 = vst.msk [vmem:[#allocation4 + $0x8] sm:$0xff] %vm461_vm0, %v416_v60 }
 0x28b   : > { %1769 = vpow2.f32 %v961_v4  ;;  %994 = vadd.xlane.f32.xlu2 %v993_v7  ;;  %v1002_v9 = vsel %vm461_vm0, %v2388_v6, 0.0 }
 0x28c   : > { %1771 = vpow2.f32 %v967_v5  ;;  %1003 = vadd.xlane.f32.xlu0 %v1002_v9  ;;  %v639_v9 = vld [vmem:[#allocation4 + $0x10] sm:$0xff] }
 0x28e   : > { %v911_v10 = vpop.xlane.xlu0 %910  ;;  %v920_v8 = vpop.xlane.xlu1 %919 }
 0x28f   : > { %v941_v12 = vsub.f32 %v2320_v11, %v911_v10  ;;  %v944_v13 = vsub.f32 %v2339_v23, %v920_v8  ;;  %v926_v15 = vpop.xlane.xlu2 %925 }
 0x290   : > { %v946_v17 = vsub.f32 %v2336_v21, %v926_v15 }
 0x291   : > { %v2397_v18 = vpop.eup %1769  ;;  %v965_v19 = vmul.f32 1.442695, %v941_v12  ;;  %v971_v20 = vmul.f32 1.442695, %v944_v13  ;;  %v640_v13 = vld [vmem:[#allocation4 + $0x18] sm:$0xff] }
 0x292   : > { %v2399_v22 = vpop.eup %1771  ;;  %v975_v25 = vmul.f32 1.442695, %v946_v17  ;;  %v999_v26 = vsel %vm461_vm0, %v2397_v18, 0.0 }
 0x293   : > { %1773 = vpow2.f32 %v965_v19  ;;  %v1008_v27 = vsel %vm461_vm0, %v2399_v22, 0.0 }
 0x294   : > { %1775 = vpow2.f32 %v971_v20  ;;  %1009 = vadd.xlane.f32.xlu1 %v1008_v27  ;;  %1000 = vadd.xlane.f32.xlu0 %v999_v26 }
 0x295   : > { %1777 = vpow2.f32 %v975_v25 }
 0x296   : > { %v917_v11 = vpop.xlane.xlu1 %916  ;;  %v932_v21 = vpop.xlane.xlu0 %931 }
 0x297   : > { %v943_v23 = vsub.f32 %v2330_v16, %v917_v11  ;;  %v923_v28 = vpop.xlane.xlu2 %922  ;;  %v948_v29 = vsub.f32 %v2350_v31, %v932_v21  ;;  %v642_v21 = vld [vmem:[#allocation4 + $0x28] sm:$0xff] }
 0x298   : > { %v945_v30 = vsub.f32 %v2326_v14, %v923_v28 }
 0x299   : > { %v2408_v32 = vpop.eup %1773  ;;  %v969_v33 = vmul.f32 1.442695, %v943_v23  ;;  %v979_v34 = vmul.f32 1.442695, %v948_v29  ;;  %v643_v23 = vld [vmem:[#allocation4 + $0x30] sm:$0xff] }
 0x29a   : > { %v2410_v37 = vpop.eup %1775  ;;  %v973_v38 = vmul.f32 1.442695, %v945_v30  ;;  %v1005_v39 = vsel %vm461_vm0, %v2408_v32, 0.0 }
 0x29b   : > { %v2414_v40 = vpop.eup %1777  ;;  %1779 = vpow2.f32 %v969_v33  ;;  %v1014_v16 = vsel %vm461_vm0, %v2410_v37, 0.0 }
 0x29c   : > { %1781 = vpow2.f32 %v973_v38  ;;  %1006 = vadd.xlane.f32.xlu1 %v1005_v39  ;;  %1015 = vadd.xlane.f32.xlu2 %v1014_v16  ;;  %v1020_v14 = vsel %vm461_vm0, %v2414_v40, 0.0  ;;  %v645_v16 = vld [vmem:[#allocation4 + $0x40] sm:$0xff] }
 0x29d   : > { %1783 = vpow2.f32 %v979_v34  ;;  %1021 = vadd.xlane.f32.xlu0 %v1020_v14  ;;  %v644_v14 = vld [vmem:[#allocation4 + $0x38] sm:$0xff] }
 0x29e   : > { %v929_v31 = vpop.xlane.xlu0 %928  ;;  %v983_v41 = vpop.xlane.xlu1 %982 }
 0x29f   : > { %v986_v42 = vpop.xlane.xlu2 %985  ;;  %v947_v43 = vsub.f32 %v2341_v24, %v929_v31 }
 0x2a0   : > { %1785 = vrcp.f32 %v986_v42 }
 0x2a1   : > { %v2421_v44 = vpop.eup %1779  ;;  %v977_v45 = vmul.f32 1.442695, %v947_v43  ;;  %1787 = vrcp.f32 %v983_v41 }
 0x2a2   : > { %v2423_v46 = vpop.eup %1781  ;;  %v1011_v48 = vsel %vm461_vm0, %v2421_v44, 0.0 }
 0x2a3   : > { %v2427_v49 = vpop.eup %1783  ;;  %1789 = vpow2.f32 %v977_v45  ;;  %v1017_v50 = vsel %vm461_vm0, %v2423_v46, 0.0  ;;  %v646_v45 = vld [vmem:[#allocation4 + $0x48] sm:$0xff] }
 0x2a4   : > { %1012 = vadd.xlane.f32.xlu2 %v1011_v48  ;;  %v1026_v24 = vsel %vm461_vm0, %v2427_v49, 0.0  ;;  %v647_v48 = vld [vmem:[#allocation4 + $0x50] sm:$0xff] }
 0x2a5   : > { %1018 = vadd.xlane.f32.xlu0 %v1017_v50  ;;  %1027 = vadd.xlane.f32.xlu1 %v1026_v24  ;;  %v651_v24 = vld [vmem:[#allocation4 + $0x70] sm:$0xff] }
 0x2a6   : > { %v1786_v51 = vpop.eup %1785 }
 0x2a7   : > { %v1046_v53 = vmul.f32 %v1786_v51, %v2360_v36  ;;  %v1788_v54 = vpop.eup %1787  ;;  %v638_v36 = vld [vmem:[#allocation4 + $0x8] sm:$0xff] }
 0x2a8   : > { %v1045_v57 = vmul.f32 %v1788_v54, %v2358_v35  ;;  %v650_v51 = vld [vmem:[#allocation4 + $0x68] sm:$0xff] }
 0x2a9   : > { %v2434_v55 = vpop.eup %1789  ;;  %1583 = vmatpush.xpose.msk.msra.mxu3 %vm461_vm0, %v1046_v53  ;;  %v652_v53 = vld [vmem:[#allocation4 + $0x78] sm:$0xff] }
 0x2aa   : > { %v1023_v56 = vsel %vm461_vm0, %v2434_v55, 0.0 }
 0x2ad   : > { %1024 = vadd.xlane.f32.xlu1 %v1023_v56  ;;  %1584 = vmatpush.xpose.msk.msra.mxu3 %vm461_vm0, %v1045_v57 }
 0x2b0   : > { %1585 = vmatmul.msk.f32.vlgmr.msra.gmra.mxu3 %vm461_vm0, %v637_v61 }
 0x2b8   : > { %1586 = vmatmul.msk.f32.gmra.mxu3 %vm461_vm0, %v638_v36 }
 0x2e5   : > { %v989_v62 = vpop.xlane.xlu2 %988 }
 0x2ee   : > { %v992_v63 = vpop.xlane.xlu0 %991 }
 0x2ef   : > { %1791 = vrcp.f32 %v992_v63 }
 0x2f0   : > { %1793 = vrcp.f32 %v989_v62 }
 0x2f5   : > { %v1792_v35 = vpop.eup %1791 }
 0x2f6   : > { %v1048_v0 = vmul.f32 %v1792_v35, %v2374_v52  ;;  %v998_v1 = vpop.xlane.xlu2 %997  ;;  %v1794_v2 = vpop.eup %1793 }
 0x2f7   : > { %1795 = vrcp.f32 %v998_v1  ;;  %v1047_v4 = vmul.f32 %v1794_v2, %v2369_v47 }
 0x2f8   : > { %1587 = vmatpush.xpose.msk.msrb.mxu1 %vm461_vm0, %v1048_v0 }
 0x2fc   : > { %1588 = vmatpush.xpose.msk.msrb.mxu1 %vm461_vm0, %v1047_v4  ;;  %v1356_v4 = vld [vmem:[#allocation11 + $0x78] sm:$0xff] }
 0x2fd   : > { %v1796_v5 = vpop.eup %1795 }
 0x2fe   : > { %v995_v7 = vpop.xlane.xlu2 %994  ;;  %v1050_v10 = vmul.f32 %v1796_v5, %v2380_v59  ;;  %v641_v59 = vld [vmem:[#allocation4 + $0x20] sm:$0xff]  ;;  %v1355_v5 = vld [vmem:[#allocation11 + $0x70] sm:$0xff] }
 0x2ff   : > { %1797 = vrcp.f32 %v995_v7  ;;  %v1004_v8 = vpop.xlane.xlu0 %1003  ;;  %1589 = vmatmul.msk.f32.vlgmr.msrb.gmra.mxu1 %vm461_vm0, %v639_v9  ;;  %v1354_v7 = vld [vmem:[#allocation11 + $0x68] sm:$0xff] }
 0x300   : > { %1799 = vrcp.f32 %v1004_v8  ;;  %1591 = vmatpush.xpose.msk.msra.mxu2 %vm461_vm0, %v1050_v10  ;;  %v1353_v10 = vld [vmem:[#allocation11 + $0x60] sm:$0xff]  ;;  %v1352_v8 = vld [vmem:[#allocation11 + $0x58] sm:$0xff] }
 0x305   : > { %v1798_v52 = vpop.eup %1797 }
 0x306   : > { %v1800_v12 = vpop.eup %1799  ;;  %v1049_v15 = vmul.f32 %v1798_v52, %v2386_v3 }
 0x307   : > { %v1052_v47 = vmul.f32 %v1800_v12, %v2388_v6  ;;  %v1010_v17 = vpop.xlane.xlu1 %1009  ;;  %v1001_v19 = vpop.xlane.xlu0 %1000  ;;  %1590 = vmatmul.msk.f32.gmra.mxu1 %vm461_vm0, %v640_v13  ;;  %v1351_v12 = vld [vmem:[#allocation11 + $0x50] sm:$0xff]  ;;  %v1350_v13 = vld [vmem:[#allocation11 + $0x48] sm:$0xff] }
 0x308   : > { %1801 = vrcp.f32 %v1010_v17  ;;  %1592 = vmatpush.xpose.msk.msra.mxu2 %vm461_vm0, %v1049_v15  ;;  %v1349_v15 = vld [vmem:[#allocation11 + $0x40] sm:$0xff]  ;;  %v1347_v17 = vld [vmem:[#allocation11 + $0x30] sm:$0xff] }
 0x309   : > { %1803 = vrcp.f32 %v1001_v19  ;;  %1595 = vmatpush.xpose.msk.msrb.mxu3 %vm461_vm0, %v1052_v47  ;;  %v1348_v47 = vld [vmem:[#allocation11 + $0x38] sm:$0xff]  ;;  %v1346_v19 = vld [vmem:[#allocation11 + $0x28] sm:$0xff] }
 0x30b   : > { %1593 = vmatmul.msk.f32.vlgmr.msra.gmra.mxu2 %vm461_vm0, %v641_v59  ;;  %v1345_v59 = vld [vmem:[#allocation11 + $0x20] sm:$0xff] }
 0x30e   : > { %v1802_v20 = vpop.eup %1801 }
 0x30f   : > { %v1804_v25 = vpop.eup %1803  ;;  %v1054_v26 = vmul.f32 %v1802_v20, %v2399_v22  ;;  %v1007_v3 = vpop.xlane.xlu1 %1006  ;;  %v1344_v20 = vld [vmem:[#allocation11 + $0x18] sm:$0xff] }
 0x310   : > { %v1016_v27 = vpop.xlane.xlu2 %1015  ;;  %1805 = vrcp.f32 %v1007_v3  ;;  %v1022_v6 = vpop.xlane.xlu0 %1021  ;;  %v1051_v11 = vmul.f32 %v1804_v25, %v2397_v18  ;;  %v1343_v25 = vld [vmem:[#allocation11 + $0x10] sm:$0xff]  ;;  %v1341_v3 = vld [vmem:[#allocation11] sm:$0xff] }
 0x311   : > { %1807 = vrcp.f32 %v1016_v27  ;;  %1599 = vmatpush.xpose.msk.msra.mxu1 %vm461_vm0, %v1054_v26  ;;  %v1342_v26 = vld [vmem:[#allocation11 + $0x8] sm:$0xff]  ;;  %v1754_v27 = vld [vmem:[%s2534_s4] ss:$0 sm:$0xff] }
 0x312   : > { %1809 = vrcp.f32 %v1022_v6  ;;  %1596 = vmatpush.xpose.msk.msrb.mxu3 %vm461_vm0, %v1051_v11 }
 0x313   : > { %1594 = vmatmul.msk.f32.gmra.mxu2 %vm461_vm0, %v642_v21 }
 0x315   : > { %1597 = vmatmul.msk.f32.vlgmr.msrb.gmra.mxu3 %vm461_vm0, %v643_v23 }
 0x316   : > { %v1806_v28 = vpop.eup %1805 }
 0x317   : > { %v1808_v22 = vpop.eup %1807  ;;  %v1053_v30 = vmul.f32 %v1806_v28, %v2408_v32 }
 0x318   : > { %v1013_v29 = vpop.xlane.xlu2 %1012  ;;  %v1810_v33 = vpop.eup %1809  ;;  %v1056_v38 = vmul.f32 %v1808_v22, %v2410_v37 }
 0x319   : > { %1811 = vrcp.f32 %v1013_v29  ;;  %v1028_v18 = vpop.xlane.xlu1 %1027  ;;  %v1019_v34 = vpop.xlane.xlu0 %1018  ;;  %v1058_v39 = vmul.f32 %v1810_v33, %v2414_v40  ;;  %1600 = vmatpush.xpose.msk.msra.mxu1 %vm461_vm0, %v1053_v30 }
 0x31a   : > { %1813 = vrcp.f32 %v1028_v18  ;;  %1603 = vmatpush.xpose.msk.msra.mxu2 %vm461_vm0, %v1056_v38 }
 0x31b   : > { %1815 = vrcp.f32 %v1019_v34  ;;  %1607 = vmatpush.xpose.msk.msra.mxu3 %vm461_vm0, %v1058_v39 }
 0x31c   : > { %1601 = vmatmul.msk.f32.vlgmr.msra.gmra.mxu1 %vm461_vm0, %v645_v16 }
 0x31d   : > { %1598 = vmatmul.msk.f32.gmra.mxu3 %vm461_vm0, %v644_v14 }
 0x31f   : > { %v1812_v32 = vpop.eup %1811 }
 0x320   : > { %v1814_v31 = vpop.eup %1813  ;;  %v1055_v37 = vmul.f32 %v1812_v32, %v2421_v44  ;;  %v649_v44 = vld [vmem:[#allocation4 + $0x60] sm:$0xff] }
 0x321   : > { %v1816_v41 = vpop.eup %1815  ;;  %v1060_v40 = vmul.f32 %v1814_v31, %v2427_v49  ;;  %v1025_v42 = vpop.xlane.xlu1 %1024 }
 0x322   : > { %v1057_v43 = vmul.f32 %v1816_v41, %v2423_v46  ;;  %1817 = vrcp.f32 %v1025_v42  ;;  %1604 = vmatpush.xpose.msk.msra.mxu2 %vm461_vm0, %v1055_v37  ;;  %v648_v46 = vld [vmem:[#allocation4 + $0x58] sm:$0xff] }
 0x323   : > { %1611 = vmatpush.xpose.msk.msrb.mxu1 %vm461_vm0, %v1060_v40 }
 0x324   : > { %1608 = vmatpush.xpose.msk.msra.mxu3 %vm461_vm0, %v1057_v43  ;;  %1602 = vmatmul.msk.f32.gmra.mxu1 %vm461_vm0, %v646_v45 }
 0x325   : > { %1605 = vmatmul.msk.f32.vlgmr.msra.gmra.mxu2 %vm461_vm0, %v647_v48 }
 0x327   : > { %1609 = vmatmul.msk.f32.vlgmr.msra.gmra.mxu3 %vm461_vm0, %v649_v44 }
 0x328   : > { %v1818_v49 = vpop.eup %1817 }
 0x329   : > { %v1059_v50 = vmul.f32 %v1818_v49, %v2434_v55 }
 0x32b   : > { %1612 = vmatpush.xpose.msk.msrb.mxu1 %vm461_vm0, %v1059_v50 }
 0x32d   : > { %1606 = vmatmul.msk.f32.gmra.mxu2 %vm461_vm0, %v648_v46 }
 0x32e   : > { %1613 = vmatmul.msk.f32.vlgmr.msrb.gmra.mxu1 %vm461_vm0, %v651_v24 }
 0x32f   : > { %1610 = vmatmul.msk.f32.gmra.mxu3 %vm461_vm0, %v650_v51 }
 0x333   : > { %v1090_v54 = vpop.f32.mrf.mxu3 }
 0x336   : > { %1614 = vmatmul.msk.f32.gmra.mxu1 %vm461_vm0, %v652_v53 }
 0x33b   : > { %v1093_v57 = vpop.f32.mrf.mxu3 }
 0x37c   : > { %v1125_v56 = vpop.f32.mrf.mxu1 }
 0x384   : > { %v1128_v58 = vpop.f32.mrf.mxu1 }
 0x38e   : > { %v1160_v61 = vpop.f32.mrf.mxu2 }
 0x396   : > { %v1163_v63 = vpop.f32.mrf.mxu2 }
 0x398   : > { %v1195_v60 = vpop.f32.mrf.mxu3 }
 0x399   : > { %v1230_v55 = vpop.f32.mrf.mxu1 }
 0x3a0   : > { %v1198_v62 = vpop.f32.mrf.mxu3 }
 0x3a1   : > { %v1233_v36 = vpop.f32.mrf.mxu1 }
 0x3a8   : > { %v1265_v1 = vpop.f32.mrf.mxu2 }
 0x3aa   : > { %v1300_v0 = vpop.f32.mrf.mxu3 }
 0x3ab   : > { %v1335_v35 = vpop.f32.mrf.mxu1 }
 0x3b0   : > { %v1268_v52 = vpop.f32.mrf.mxu2 }
 0x3b2   : > { %v1303_v9 = vpop.f32.mrf.mxu3 }
 0x3b3   : > { %v1338_v2 = vpop.f32.mrf.mxu1 }
 0x3b4   : > { %1631 = vmatpush.lsf.msrb.mxu2 %v1338_v2 }
 0x3b6   : > { %1393 = vmatpush.msra.mxu2 %v1356_v4 }
 0x3b8   : > { %1632 = vmatpush.lsf.msrb.mxu2 %v1335_v35 }
 0x3ba   : > { %1394 = vmatpush.msra.mxu2 %v1355_v5 }
 0x3bc   : > { %1633 = vmatpush.lsf.msrb.mxu2 %v1303_v9 }
 0x3be   : > { %1395 = vmatpush.msra.mxu2 %v1354_v7 }
 0x3c0   : > { %1634 = vmatpush.lsf.msrb.mxu2 %v1300_v0 }
 0x3c2   : > { %1396 = vmatpush.msra.mxu2 %v1353_v10 }
 0x3c4   : > { %1635 = vmatpush.lsf.msrb.mxu2 %v1268_v52 }
 0x3c6   : > { %1397 = vmatpush.msra.mxu2 %v1352_v8 }
 0x3c8   : > { %1636 = vmatpush.lsf.msrb.mxu2 %v1265_v1 }
 0x3ca   : > { %1398 = vmatpush.msra.mxu2 %v1351_v12 }
 0x3cc   : > { %1637 = vmatpush.lsf.msrb.mxu2 %v1233_v36 }
 0x3ce   : > { %1399 = vmatpush.msra.mxu2 %v1350_v13 }
 0x3d0   : > { %1638 = vmatpush.lsf.msrb.mxu2 %v1230_v55 }
 0x3d2   : > { %1400 = vmatpush.msra.mxu2 %v1349_v15 }
 0x3d4   : > { %1639 = vmatpush.lsf.msrb.mxu2 %v1198_v62 }
 0x3d6   : > { %1401 = vmatpush.msra.mxu2 %v1348_v47 }
 0x3d8   : > { %1640 = vmatpush.lsf.msrb.mxu2 %v1195_v60 }
 0x3da   : > { %1402 = vmatpush.msra.mxu2 %v1347_v17 }
 0x3dc   : > { %1641 = vmatpush.lsf.msrb.mxu2 %v1163_v63 }
 0x3de   : > { %1403 = vmatpush.msra.mxu2 %v1346_v19 }
 0x3e0   : > { %1642 = vmatpush.lsf.msrb.mxu2 %v1160_v61 }
 0x3e2   : > { %1404 = vmatpush.msra.mxu2 %v1345_v59 }
 0x3e4   : > { %1643 = vmatpush.lsf.msrb.mxu2 %v1128_v58 }
 0x3e6   : > { %1405 = vmatpush.msra.mxu2 %v1344_v20 }
 0x3e8   : > { %1644 = vmatpush.lsf.msrb.mxu2 %v1125_v56 }
 0x3ea   : > { %1406 = vmatpush.msra.mxu2 %v1343_v25 }
 0x3ec   : > { %1645 = vmatpush.lsf.msrb.mxu2 %v1093_v57 }
 0x3ee   : > { %1407 = vmatpush.msra.mxu2 %v1342_v26 }
 0x3f0   : > { %1646 = vmatpush.lsf.msrb.mxu2 %v1090_v54 }
 0x3f1   : > { %1647 = vllmr.2.mxu2 }
 0x3f2   : > { %1408 = vmatpush.msra.mxu2 %v1341_v3 }
 0x412   : > { %1648 = vmatmul.lmr.bf16.vlgmr.msra.gmra.2.mxu2 }
 0x41a   : > { %1649 = vmatmul.lmr.bf16.gmra.2.mxu2 }
 0x495   : > { %v1410_v6 = vpop.f32.mrf.mxu2 }
 0x496   : > { %v1411_v11 = vadd.f32 %v1754_v27, %v1410_v6 }
 0x498   : > { %1416 = vst [vmem:[%s308_s27] sm:$0xff] %v1411_v11 }
 0x49d   : > { %v1413_v21 = vpop.f32.mrf.mxu2 }
 0x49e   : > { %v1414_v23 = vadd.f32 %v1754_v27, %v1413_v21 }
 0x4a0   : > { %1417 = vst [vmem:[%s308_s27 + $0x8] sm:$0xff] %v1414_v23 }
 0x4a1   : > { %1966 = shalt.err (!%p1963_p0)
}
 0x4a2   : > { %s2043_s10 = smov 128   ;;  %s2044_s16 = smov 8  }
 0x4a3   : > { %1664 = dma.vmem_to_hbm [thread:$0]  (%p2180_p5), %s1434_s14, 256, %s1436_s13, %s1419_s1, %s2043_s10, %s2043_s10, %s2044_s16  }
 0x4a4 PF: > { %s1450_s17 = sand.u32 1, %s2009_s18   ;;  %p1681_p3 = pnand %p1557_p11, %p2125_p6 }
 0x4a5   : > { %s1451_s24 = scalar_lea.sflag [#allocation7], %s1450_s17 }
 0x4a6   : > { %p1682_p7 = pneg %p1681_p3 }
 0x4a8   : > { %2004 = dma.done.wait (%p1682_p7), %s1451_s24, 256  }
 0x4a9   : > { %2006 = vsyncadd (%p1682_p7), %s1451_s24, 4294967040  ;;  %s23_s23 = sadd.s32 1, %s2029_s23   ;;  %s2554_s18 = smov %s2013_s19 }
 0x4aa   : > { %p20_p9 = scmp.ge.s32.totalorder %s23_s23, 4   ;;  %s2555_s19 = smov %s2017_s20 }
 0x4ab   : > { %s2556_s20 = smov %s2189_s25  ;;  %s2557_s21 = smov %s2025_s22 }
 0x4ac   : > { %s2558_s22 = smov %s2560_s7  ;;  %22 = sbr.rel (!%p20_p9) target bundleno = 12 (0xc), region = 109 }
 0x4b1   :  { %1457 = vsyncpa [#allocation6], 1 }
 0x4b2   :  { %1459 = vsyncpa [#allocation6 + $0x1], 1 }
 0x4b3   :  { %1460 = vsyncpa [#allocation9], 1 }
 0x4b4   :  { %1461 = vsyncpa [#allocation12], 1 }
 0x4b5   :  { %1462 = vsyncpa [#allocation7], 1 }
 0x4b6   :  { %1464 = vsyncpa [#allocation7 + $0x1], 1 }

</bundles_post_ra>
